<compile_context>
chip_gen: v5e
topology: v5e:2x2
jax: 0.10.0
libtpu: 0.0.40
codegen_flags: <defaults>
</compile_context>

<pallas_src>
import numpy as np
import jax
import jax.numpy as jnp
from jax.experimental import pallas as pl
from jax.experimental.pallas import tpu as pltpu


# ------------------------------ Pallas kernel ------------------------------

def _stem_kernel(xs_ref, w_ref, scale_ref, shift_ref, o_ref, pool_scr):
    """Fused 7x7/s2 conv (9 space-to-depth taps) + BN + ReLU + 3x3/s2 maxpool.

    xs_ref   : (1, Hq, Wq, K)    bf16  4x space-to-depth padded input, K = 16*Cin
    w_ref    : (9, K, 4*C)       bf16  tap weights; output channels are
                                       (row-parity, col-parity, C), parity-major
    scale_ref: (1, 4*C)          f32   folded BN scale (tiled over 4 parities)
    shift_ref: (1, 4*C)          f32   folded BN shift
    o_ref    : (1, Hp, Wp, C)    f32   pooled output
    pool_scr : (Hp+1, Wp+1, 4*C) f32   zero-padded (top/left) parity-separated
                                       conv+BN+ReLU result used by the maxpool
    """
    Hp1, Wp1, N4 = pool_scr.shape
    Hp, Wp = Hp1 - 1, Wp1 - 1
    C = N4 // 4
    K = w_ref.shape[1]

    # ---- 7x7 stride-2 conv as 9 stride-1 taps over the s2d input ----------
    acc = jnp.zeros((Hp * Wp, N4), jnp.float32)
    for t in range(9):
        kh3, kw3 = t // 3, t % 3
        tap = xs_ref[0, pl.ds(kh3, Hp), pl.ds(kw3, Wp), :]        # (Hp, Wp, K) bf16
        acc = acc + jnp.dot(tap.reshape(Hp * Wp, K), w_ref[t],
                            preferred_element_type=jnp.float32)   # (Hp*Wp, 4C)

    # ---- fused BatchNorm (inference) + ReLU --------------------------------
    y = jnp.maximum(acc * scale_ref[0] + shift_ref[0], 0.0)

    # ---- 3x3 stride-2 maxpool (pad 1) --------------------------------------
    # Conv-output parity planes live in the channel groups, so the stride-2 pool
    # is a max over 9 statically shifted reads of a zero-padded scratch
    # (zero pad == -inf pad because the ReLU output is >= 0).
    pool_scr[...] = jnp.zeros_like(pool_scr)
    pool_scr[pl.ds(1, Hp), pl.ds(1, Wp), :] = y.reshape(Hp, Wp, N4)

    def grp(r0, c0, g):
        return pool_scr[pl.ds(r0, Hp), pl.ds(c0, Wp), pl.ds(g * C, C)]

    # group 0: even row/even col, 1: even/odd, 2: odd/even, 3: odd/odd
    # offset 1 == "this pool cell", offset 0 == "previous cell" (top/left pad).
    out = grp(1, 1, 0)
    out = jnp.maximum(out, grp(1, 1, 1))
    out = jnp.maximum(out, grp(1, 0, 1))
    out = jnp.maximum(out, grp(1, 1, 2))
    out = jnp.maximum(out, grp(0, 1, 2))
    out = jnp.maximum(out, grp(1, 1, 3))
    out = jnp.maximum(out, grp(1, 0, 3))
    out = jnp.maximum(out, grp(0, 1, 3))
    out = jnp.maximum(out, grp(0, 0, 3))
    o_ref[0] = out


# ------------------------------ host wrappers -------------------------------

def _space_to_depth4_weights(w_hwio):
    """(7,7,Cin,Cout) stride-2 conv weight -> (9, 16*Cin, 4*Cout) s2d tap weights.

    Tap t = kh3*3 + kw3 contracts the (p, q, cin) channels of the 4x space-to-depth
    input and produces (a, b, cout) parity-major output channels, where (a, b) is
    the conv-output pixel parity.  Out-of-range taps get zero weights.
    """
    Cin, Cout = w_hwio.shape[2], w_hwio.shape[3]
    k3 = np.arange(3)[:, None, None]          # kh3 / kw3
    ph = np.arange(4)[None, :, None]          # p / q   (phase inside the 4-block)
    par = np.arange(2)[None, None, :]         # a / b   (output pixel parity)
    k = 4 * k3 + ph - 2 * par                 # original 7x7 tap index, (3,4,2)
    valid = (k >= 0) & (k < 7)
    kc = np.clip(k, 0, 6)

    idx_h = kc[:, :, :, None, None, None]
    idx_w = kc[None, None, None, :, :, :]
    w_big = w_hwio[idx_h, idx_w, :, :]        # (3,4,2, 3,4,2, Cin, Cout)
    mask = valid[:, :, :, None, None, None] & valid[None, None, None, :, :, :]
    w_big = w_big * mask[..., None, None].astype(w_big.dtype)
    # (kh3,p,a,kw3,q,b,ci,co) -> (kh3,kw3,p,q,ci,a,b,co)
    w_big = jnp.transpose(w_big, (0, 3, 1, 4, 6, 2, 5, 7))
    return w_big.reshape(9, 16 * Cin, 4 * Cout)


def cnn_stem_forward(x_nchw, params):
    """conv1(7x7/s2, bias=False) -> bn1 (inference) -> relu -> maxpool(3x3/s2)."""
    x = jnp.transpose(x_nchw, (0, 2, 3, 1)).astype(jnp.float32)   # NHWC
    B, H, W, Cin = x.shape
    assert H % 4 == 0 and W % 4 == 0, "stem expects spatial dims divisible by 4"
    w_hwio = jnp.transpose(params['conv_w'], (2, 3, 1, 0))        # (7,7,Cin,Cout)
    Cout = w_hwio.shape[3]
    Hp, Wp = H // 4, W // 4                                       # pooled output
    Hq, Wq = Hp + 2, Wp + 2
    K, N4 = 16 * Cin, 4 * Cout

    # BN (inference) folded into per-channel scale/shift, tiled over the 4
    # conv-output parity groups produced by the kernel.
    scale = params['bn_gamma'] * jax.lax.rsqrt(params['bn_var'] + 1e-5)
    shift = params['bn_beta'] - params['bn_mean'] * scale
    scale4 = jnp.tile(scale, 4)[None, :].astype(jnp.float32)      # (1, 4*Cout)
    shift4 = jnp.tile(shift, 4)[None, :].astype(jnp.float32)

    # conv pad 3 (+ extra zero rows/cols so the padded extent is a multiple of 4),
    # then a one-time 4x space-to-depth reshuffle of the input in XLA.
    x_pad = jnp.pad(x, ((0, 0), (3, 5), (3, 5), (0, 0)))
    xs4 = (x_pad.reshape(B, Hq, 4, Wq, 4, Cin)
                .transpose(0, 1, 3, 2, 4, 5)
                .reshape(B, Hq, Wq, K)).astype(jnp.bfloat16)
    w4 = _space_to_depth4_weights(w_hwio).astype(jnp.bfloat16)

    out = pl.pallas_call(
        _stem_kernel,
        out_shape=jax.ShapeDtypeStruct((B, Hp, Wp, Cout), jnp.float32),
        grid=(B,),
        in_specs=[
            pl.BlockSpec((1, Hq, Wq, K), lambda b: (b, 0, 0, 0)),   # streamed
            pl.BlockSpec((9, K, N4), lambda b: (0, 0, 0)),          # resident
            pl.BlockSpec((1, N4), lambda b: (0, 0)),                # resident
            pl.BlockSpec((1, N4), lambda b: (0, 0)),                # resident
        ],
        out_specs=pl.BlockSpec((1, Hp, Wp, Cout), lambda b: (b, 0, 0, 0)),
        scratch_shapes=[pltpu.VMEM((Hp + 1, Wp + 1, N4), jnp.float32)],
        compiler_params=pltpu.CompilerParams(
            dimension_semantics=("parallel",)),
    )(xs4, w4, scale4, shift4)

    return jnp.transpose(out, (0, 3, 1, 2))                        # back to NCHW


def init_params(key, cin=3, cout=64):
    k1, k2, k3, k4, k5 = jax.random.split(key, 5)
    return {
        'conv_w': 0.05 * jax.random.normal(k1, (cout, cin, 7, 7), jnp.float32),  # OIHW
        'bn_gamma': 1.0 + 0.1 * jax.random.normal(k2, (cout,), jnp.float32),
        'bn_beta': 0.1 * jax.random.normal(k3, (cout,), jnp.float32),
        'bn_mean': 0.1 * jax.random.normal(k4, (cout,), jnp.float32),
        'bn_var': jax.random.uniform(k5, (cout,), jnp.float32, 0.5, 1.5),
    }


def _reference_stem(x_nchw, p):
    """Pure-XLA reference with the same bf16 rounding of the matmul operands."""
    x = jnp.transpose(x_nchw, (0, 2, 3, 1))
    x = x.astype(jnp.bfloat16).astype(jnp.float32)
    w = jnp.transpose(p['conv_w'], (2, 3, 1, 0)).astype(jnp.bfloat16).astype(jnp.float32)
    y = jax.lax.conv_general_dilated(
        x, w, window_strides=(2, 2), padding=((3, 3), (3, 3)),
        dimension_numbers=('NHWC', 'HWIO', 'NHWC'),
        precision=jax.lax.Precision.HIGHEST)
    scale = p['bn_gamma'] * jax.lax.rsqrt(p['bn_var'] + 1e-5)
    shift = p['bn_beta'] - p['bn_mean'] * scale
    y = jnp.maximum(y * scale + shift, 0.0)
    y = jax.lax.reduce_window(y, -jnp.inf, jax.lax.max,
                              window_dimensions=(1, 3, 3, 1),
                              window_strides=(1, 2, 2, 1),
                              padding=((0, 0), (1, 1), (1, 1), (0, 0)))
    return jnp.transpose(y, (0, 3, 1, 2))


if __name__ == "__main__":
    key = jax.random.PRNGKey(0)
    kx, kp = jax.random.split(key)

    B, Cin, H, W = 2, 3, 32, 32
    Cout = 64
    x = jax.random.normal(kx, (B, Cin, H, W), jnp.float32)
    params = init_params(kp, cin=Cin, cout=Cout)

    out = jax.jit(cnn_stem_forward)(x, params)
    jax.block_until_ready(out)
    assert out.shape == (B, Cout, H // 4, W // 4), out.shape

    ref = _reference_stem(x, params)
    err = float(jnp.max(jnp.abs(out - ref)))
    assert err < 1e-2, f"max abs error vs XLA reference: {err}"

    print("KERNEL_OK")
</pallas_src>

<mosaic_0001>
module attributes {stable_mosaic.version = 11 : i64} {
  func.func @_stem_kernel(%arg0: i32, %arg1: memref<1x10x10x48xbf16, #tpu.memory_space<vmem>>, %arg2: memref<9x48x256xbf16, #tpu.memory_space<vmem>>, %arg3: memref<1x256xf32, #tpu.memory_space<vmem>>, %arg4: memref<1x256xf32, #tpu.memory_space<vmem>>, %arg5: memref<1x8x8x64xf32, #tpu.memory_space<vmem>>, %arg6: memref<9x9x256xf32, #tpu.memory_space<vmem>>) attributes {dimension_semantics = [#tpu.dimension_semantics<parallel>], iteration_bounds = array<i64: 2>, scalar_prefetch = 0 : i64, scratch_operands = 1 : i64, tpu.core_type = #tpu.core_type<tc>, window_params = [{transform_indices = @transform_0, window_bounds = array<i64: 1, 10, 10, 48>}, {pipeline_mode = #tpu.pipeline_mode<synchronous>, transform_indices = @transform_1, window_bounds = array<i64: 9, 48, 256>}, {pipeline_mode = #tpu.pipeline_mode<synchronous>, transform_indices = @transform_2, window_bounds = array<i64: 1, 256>}, {pipeline_mode = #tpu.pipeline_mode<synchronous>, transform_indices = @transform_3, window_bounds = array<i64: 1, 256>}, {transform_indices = @transform_4, window_bounds = array<i64: 1, 8, 8, 64>}]} {
    %cst = arith.constant 0.000000e+00 : f32
    %0 = vector.broadcast %cst : f32 to vector<64x256xf32>
    %c0 = arith.constant 0 : index
    %c0_0 = arith.constant 0 : index
    %c0_1 = arith.constant 0 : index
    %c0_2 = arith.constant 0 : index
    %1 = vector.load %arg1[%c0, %c0_0, %c0_1, %c0_2] : memref<1x10x10x48xbf16, #tpu.memory_space<vmem>>, vector<1x8x8x48xbf16>
    %2 = vector.shape_cast %1 : vector<1x8x8x48xbf16> to vector<8x8x48xbf16>
    %3 = vector.shape_cast %2 : vector<8x8x48xbf16> to vector<64x48xbf16>
    %c0_3 = arith.constant 0 : index
    %c0_4 = arith.constant 0 : index
    %c0_5 = arith.constant 0 : index
    %4 = vector.load %arg2[%c0_3, %c0_4, %c0_5] : memref<9x48x256xbf16, #tpu.memory_space<vmem>>, vector<1x48x256xbf16>
    %5 = vector.shape_cast %4 : vector<1x48x256xbf16> to vector<48x256xbf16>
    %cst_6 = arith.constant dense<0.000000e+00> : vector<64x256xf32>
    %6 = tpu.matmul %3, %5, %cst_6 {dimension_numbers = #tpu.dot_dimension_numbers<[1], [0], [0], [1], [0, 0, 1, 1], [], []>} : vector<64x48xbf16>, vector<48x256xbf16>, vector<64x256xf32> -> vector<64x256xf32>
    %7 = arith.addf %0, %6 : vector<64x256xf32>
    %c0_7 = arith.constant 0 : index
    %c0_8 = arith.constant 0 : index
    %c1 = arith.constant 1 : index
    %c0_9 = arith.constant 0 : index
    %8 = vector.load %arg1[%c0_7, %c0_8, %c1, %c0_9] : memref<1x10x10x48xbf16, #tpu.memory_space<vmem>>, vector<1x8x8x48xbf16>
    %9 = vector.shape_cast %8 : vector<1x8x8x48xbf16> to vector<8x8x48xbf16>
    %10 = vector.shape_cast %9 : vector<8x8x48xbf16> to vector<64x48xbf16>
    %c1_10 = arith.constant 1 : index
    %c0_11 = arith.constant 0 : index
    %c0_12 = arith.constant 0 : index
    %11 = vector.load %arg2[%c1_10, %c0_11, %c0_12] : memref<9x48x256xbf16, #tpu.memory_space<vmem>>, vector<1x48x256xbf16>
    %12 = vector.shape_cast %11 : vector<1x48x256xbf16> to vector<48x256xbf16>
    %cst_13 = arith.constant dense<0.000000e+00> : vector<64x256xf32>
    %13 = tpu.matmul %10, %12, %cst_13 {dimension_numbers = #tpu.dot_dimension_numbers<[1], [0], [0], [1], [0, 0, 1, 1], [], []>} : vector<64x48xbf16>, vector<48x256xbf16>, vector<64x256xf32> -> vector<64x256xf32>
    %14 = arith.addf %7, %13 : vector<64x256xf32>
    %c0_14 = arith.constant 0 : index
    %c0_15 = arith.constant 0 : index
    %c2 = arith.constant 2 : index
    %c0_16 = arith.constant 0 : index
    %15 = vector.load %arg1[%c0_14, %c0_15, %c2, %c0_16] : memref<1x10x10x48xbf16, #tpu.memory_space<vmem>>, vector<1x8x8x48xbf16>
    %16 = vector.shape_cast %15 : vector<1x8x8x48xbf16> to vector<8x8x48xbf16>
    %17 = vector.shape_cast %16 : vector<8x8x48xbf16> to vector<64x48xbf16>
    %c2_17 = arith.constant 2 : index
    %c0_18 = arith.constant 0 : index
    %c0_19 = arith.constant 0 : index
    %18 = vector.load %arg2[%c2_17, %c0_18, %c0_19] : memref<9x48x256xbf16, #tpu.memory_space<vmem>>, vector<1x48x256xbf16>
    %19 = vector.shape_cast %18 : vector<1x48x256xbf16> to vector<48x256xbf16>
    %cst_20 = arith.constant dense<0.000000e+00> : vector<64x256xf32>
    %20 = tpu.matmul %17, %19, %cst_20 {dimension_numbers = #tpu.dot_dimension_numbers<[1], [0], [0], [1], [0, 0, 1, 1], [], []>} : vector<64x48xbf16>, vector<48x256xbf16>, vector<64x256xf32> -> vector<64x256xf32>
    %21 = arith.addf %14, %20 : vector<64x256xf32>
    %c0_21 = arith.constant 0 : index
    %c1_22 = arith.constant 1 : index
    %c0_23 = arith.constant 0 : index
    %c0_24 = arith.constant 0 : index
    %22 = vector.load %arg1[%c0_21, %c1_22, %c0_23, %c0_24] : memref<1x10x10x48xbf16, #tpu.memory_space<vmem>>, vector<1x8x8x48xbf16>
    %23 = vector.shape_cast %22 : vector<1x8x8x48xbf16> to vector<8x8x48xbf16>
    %24 = vector.shape_cast %23 : vector<8x8x48xbf16> to vector<64x48xbf16>
    %c3 = arith.constant 3 : index
    %c0_25 = arith.constant 0 : index
    %c0_26 = arith.constant 0 : index
    %25 = vector.load %arg2[%c3, %c0_25, %c0_26] : memref<9x48x256xbf16, #tpu.memory_space<vmem>>, vector<1x48x256xbf16>
    %26 = vector.shape_cast %25 : vector<1x48x256xbf16> to vector<48x256xbf16>
    %cst_27 = arith.constant dense<0.000000e+00> : vector<64x256xf32>
    %27 = tpu.matmul %24, %26, %cst_27 {dimension_numbers = #tpu.dot_dimension_numbers<[1], [0], [0], [1], [0, 0, 1, 1], [], []>} : vector<64x48xbf16>, vector<48x256xbf16>, vector<64x256xf32> -> vector<64x256xf32>
    %28 = arith.addf %21, %27 : vector<64x256xf32>
    %c0_28 = arith.constant 0 : index
    %c1_29 = arith.constant 1 : index
    %c1_30 = arith.constant 1 : index
    %c0_31 = arith.constant 0 : index
    %29 = vector.load %arg1[%c0_28, %c1_29, %c1_30, %c0_31] : memref<1x10x10x48xbf16, #tpu.memory_space<vmem>>, vector<1x8x8x48xbf16>
    %30 = vector.shape_cast %29 : vector<1x8x8x48xbf16> to vector<8x8x48xbf16>
    %31 = vector.shape_cast %30 : vector<8x8x48xbf16> to vector<64x48xbf16>
    %c4 = arith.constant 4 : index
    %c0_32 = arith.constant 0 : index
    %c0_33 = arith.constant 0 : index
    %32 = vector.load %arg2[%c4, %c0_32, %c0_33] : memref<9x48x256xbf16, #tpu.memory_space<vmem>>, vector<1x48x256xbf16>
    %33 = vector.shape_cast %32 : vector<1x48x256xbf16> to vector<48x256xbf16>
    %cst_34 = arith.constant dense<0.000000e+00> : vector<64x256xf32>
    %34 = tpu.matmul %31, %33, %cst_34 {dimension_numbers = #tpu.dot_dimension_numbers<[1], [0], [0], [1], [0, 0, 1, 1], [], []>} : vector<64x48xbf16>, vector<48x256xbf16>, vector<64x256xf32> -> vector<64x256xf32>
    %35 = arith.addf %28, %34 : vector<64x256xf32>
    %c0_35 = arith.constant 0 : index
    %c1_36 = arith.constant 1 : index
    %c2_37 = arith.constant 2 : index
    %c0_38 = arith.constant 0 : index
    %36 = vector.load %arg1[%c0_35, %c1_36, %c2_37, %c0_38] : memref<1x10x10x48xbf16, #tpu.memory_space<vmem>>, vector<1x8x8x48xbf16>
    %37 = vector.shape_cast %36 : vector<1x8x8x48xbf16> to vector<8x8x48xbf16>
    %38 = vector.shape_cast %37 : vector<8x8x48xbf16> to vector<64x48xbf16>
    %c5 = arith.constant 5 : index
    %c0_39 = arith.constant 0 : index
    %c0_40 = arith.constant 0 : index
    %39 = vector.load %arg2[%c5, %c0_39, %c0_40] : memref<9x48x256xbf16, #tpu.memory_space<vmem>>, vector<1x48x256xbf16>
    %40 = vector.shape_cast %39 : vector<1x48x256xbf16> to vector<48x256xbf16>
    %cst_41 = arith.constant dense<0.000000e+00> : vector<64x256xf32>
    %41 = tpu.matmul %38, %40, %cst_41 {dimension_numbers = #tpu.dot_dimension_numbers<[1], [0], [0], [1], [0, 0, 1, 1], [], []>} : vector<64x48xbf16>, vector<48x256xbf16>, vector<64x256xf32> -> vector<64x256xf32>
    %42 = arith.addf %35, %41 : vector<64x256xf32>
    %c0_42 = arith.constant 0 : index
    %c2_43 = arith.constant 2 : index
    %c0_44 = arith.constant 0 : index
    %c0_45 = arith.constant 0 : index
    %43 = vector.load %arg1[%c0_42, %c2_43, %c0_44, %c0_45] : memref<1x10x10x48xbf16, #tpu.memory_space<vmem>>, vector<1x8x8x48xbf16>
    %44 = vector.shape_cast %43 : vector<1x8x8x48xbf16> to vector<8x8x48xbf16>
    %45 = vector.shape_cast %44 : vector<8x8x48xbf16> to vector<64x48xbf16>
    %c6 = arith.constant 6 : index
    %c0_46 = arith.constant 0 : index
    %c0_47 = arith.constant 0 : index
    %46 = vector.load %arg2[%c6, %c0_46, %c0_47] : memref<9x48x256xbf16, #tpu.memory_space<vmem>>, vector<1x48x256xbf16>
    %47 = vector.shape_cast %46 : vector<1x48x256xbf16> to vector<48x256xbf16>
    %cst_48 = arith.constant dense<0.000000e+00> : vector<64x256xf32>
    %48 = tpu.matmul %45, %47, %cst_48 {dimension_numbers = #tpu.dot_dimension_numbers<[1], [0], [0], [1], [0, 0, 1, 1], [], []>} : vector<64x48xbf16>, vector<48x256xbf16>, vector<64x256xf32> -> vector<64x256xf32>
    %49 = arith.addf %42, %48 : vector<64x256xf32>
    %c0_49 = arith.constant 0 : index
    %c2_50 = arith.constant 2 : index
    %c1_51 = arith.constant 1 : index
    %c0_52 = arith.constant 0 : index
    %50 = vector.load %arg1[%c0_49, %c2_50, %c1_51, %c0_52] : memref<1x10x10x48xbf16, #tpu.memory_space<vmem>>, vector<1x8x8x48xbf16>
    %51 = vector.shape_cast %50 : vector<1x8x8x48xbf16> to vector<8x8x48xbf16>
    %52 = vector.shape_cast %51 : vector<8x8x48xbf16> to vector<64x48xbf16>
    %c7 = arith.constant 7 : index
    %c0_53 = arith.constant 0 : index
    %c0_54 = arith.constant 0 : index
    %53 = vector.load %arg2[%c7, %c0_53, %c0_54] : memref<9x48x256xbf16, #tpu.memory_space<vmem>>, vector<1x48x256xbf16>
    %54 = vector.shape_cast %53 : vector<1x48x256xbf16> to vector<48x256xbf16>
    %cst_55 = arith.constant dense<0.000000e+00> : vector<64x256xf32>
    %55 = tpu.matmul %52, %54, %cst_55 {dimension_numbers = #tpu.dot_dimension_numbers<[1], [0], [0], [1], [0, 0, 1, 1], [], []>} : vector<64x48xbf16>, vector<48x256xbf16>, vector<64x256xf32> -> vector<64x256xf32>
    %56 = arith.addf %49, %55 : vector<64x256xf32>
    %c0_56 = arith.constant 0 : index
    %c2_57 = arith.constant 2 : index
    %c2_58 = arith.constant 2 : index
    %c0_59 = arith.constant 0 : index
    %57 = vector.load %arg1[%c0_56, %c2_57, %c2_58, %c0_59] : memref<1x10x10x48xbf16, #tpu.memory_space<vmem>>, vector<1x8x8x48xbf16>
    %58 = vector.shape_cast %57 : vector<1x8x8x48xbf16> to vector<8x8x48xbf16>
    %59 = vector.shape_cast %58 : vector<8x8x48xbf16> to vector<64x48xbf16>
    %c8 = arith.constant 8 : index
    %c0_60 = arith.constant 0 : index
    %c0_61 = arith.constant 0 : index
    %60 = vector.load %arg2[%c8, %c0_60, %c0_61] : memref<9x48x256xbf16, #tpu.memory_space<vmem>>, vector<1x48x256xbf16>
    %61 = vector.shape_cast %60 : vector<1x48x256xbf16> to vector<48x256xbf16>
    %cst_62 = arith.constant dense<0.000000e+00> : vector<64x256xf32>
    %62 = tpu.matmul %59, %61, %cst_62 {dimension_numbers = #tpu.dot_dimension_numbers<[1], [0], [0], [1], [0, 0, 1, 1], [], []>} : vector<64x48xbf16>, vector<48x256xbf16>, vector<64x256xf32> -> vector<64x256xf32>
    %63 = arith.addf %56, %62 : vector<64x256xf32>
    %c0_63 = arith.constant 0 : index
    %c0_64 = arith.constant 0 : index
    %64 = vector.load %arg3[%c0_63, %c0_64] : memref<1x256xf32, #tpu.memory_space<vmem>>, vector<1x256xf32>
    %65 = vector.shape_cast %64 : vector<1x256xf32> to vector<256xf32>
    %66 = vector.shape_cast %65 : vector<256xf32> to vector<1x256xf32>
    %67 = vector.broadcast %66 : vector<1x256xf32> to vector<64x256xf32>
    %68 = arith.mulf %63, %67 : vector<64x256xf32>
    %c0_65 = arith.constant 0 : index
    %c0_66 = arith.constant 0 : index
    %69 = vector.load %arg4[%c0_65, %c0_66] : memref<1x256xf32, #tpu.memory_space<vmem>>, vector<1x256xf32>
    %70 = vector.shape_cast %69 : vector<1x256xf32> to vector<256xf32>
    %71 = vector.shape_cast %70 : vector<256xf32> to vector<1x256xf32>
    %72 = vector.broadcast %71 : vector<1x256xf32> to vector<64x256xf32>
    %73 = arith.addf %68, %72 : vector<64x256xf32>
    %cst_67 = arith.constant 0.000000e+00 : f32
    %74 = vector.broadcast %cst_67 : f32 to vector<64x256xf32>
    %75 = arith.maximumf %73, %74 : vector<64x256xf32>
    %cst_68 = arith.constant 0.000000e+00 : f32
    %76 = vector.broadcast %cst_68 : f32 to vector<9x9x256xf32>
    %c0_69 = arith.constant 0 : index
    %c0_70 = arith.constant 0 : index
    %c0_71 = arith.constant 0 : index
    %77 = vector.load %arg6[%c0_69, %c0_70, %c0_71] : memref<9x9x256xf32, #tpu.memory_space<vmem>>, vector<9x9x256xf32>
    tpu.vector_store %arg6[%c0_69, %c0_70, %c0_71], %76 {strides = array<i32>} : memref<9x9x256xf32, #tpu.memory_space<vmem>>, vector<9x9x256xf32>,
    %78 = vector.shape_cast %75 : vector<64x256xf32> to vector<8x8x256xf32>
    %c1_72 = arith.constant 1 : index
    %c1_73 = arith.constant 1 : index
    %c0_74 = arith.constant 0 : index
    %79 = vector.load %arg6[%c1_72, %c1_73, %c0_74] : memref<9x9x256xf32, #tpu.memory_space<vmem>>, vector<8x8x256xf32>
    tpu.vector_store %arg6[%c1_72, %c1_73, %c0_74], %78 {strides = array<i32>} : memref<9x9x256xf32, #tpu.memory_space<vmem>>, vector<8x8x256xf32>,
    %c1_75 = arith.constant 1 : index
    %c1_76 = arith.constant 1 : index
    %c0_77 = arith.constant 0 : index
    %80 = vector.load %arg6[%c1_75, %c1_76, %c0_77] : memref<9x9x256xf32, #tpu.memory_space<vmem>>, vector<8x8x64xf32>
    %c1_78 = arith.constant 1 : index
    %c1_79 = arith.constant 1 : index
    %c64 = arith.constant 64 : index
    %81 = vector.load %arg6[%c1_78, %c1_79, %c64] : memref<9x9x256xf32, #tpu.memory_space<vmem>>, vector<8x8x64xf32>
    %82 = arith.maximumf %80, %81 : vector<8x8x64xf32>
    %c1_80 = arith.constant 1 : index
    %c0_81 = arith.constant 0 : index
    %c64_82 = arith.constant 64 : index
    %83 = vector.load %arg6[%c1_80, %c0_81, %c64_82] : memref<9x9x256xf32, #tpu.memory_space<vmem>>, vector<8x8x64xf32>
    %84 = arith.maximumf %82, %83 : vector<8x8x64xf32>
    %c1_83 = arith.constant 1 : index
    %c1_84 = arith.constant 1 : index
    %c128 = arith.constant 128 : index
    %85 = vector.load %arg6[%c1_83, %c1_84, %c128] : memref<9x9x256xf32, #tpu.memory_space<vmem>>, vector<8x8x64xf32>
    %86 = arith.maximumf %84, %85 : vector<8x8x64xf32>
    %c0_85 = arith.constant 0 : index
    %c1_86 = arith.constant 1 : index
    %c128_87 = arith.constant 128 : index
    %87 = vector.load %arg6[%c0_85, %c1_86, %c128_87] : memref<9x9x256xf32, #tpu.memory_space<vmem>>, vector<8x8x64xf32>
    %88 = arith.maximumf %86, %87 : vector<8x8x64xf32>
    %c1_88 = arith.constant 1 : index
    %c1_89 = arith.constant 1 : index
    %c192 = arith.constant 192 : index
    %89 = vector.load %arg6[%c1_88, %c1_89, %c192] : memref<9x9x256xf32, #tpu.memory_space<vmem>>, vector<8x8x64xf32>
    %90 = arith.maximumf %88, %89 : vector<8x8x64xf32>
    %c1_90 = arith.constant 1 : index
    %c0_91 = arith.constant 0 : index
    %c192_92 = arith.constant 192 : index
    %91 = vector.load %arg6[%c1_90, %c0_91, %c192_92] : memref<9x9x256xf32, #tpu.memory_space<vmem>>, vector<8x8x64xf32>
    %92 = arith.maximumf %90, %91 : vector<8x8x64xf32>
    %c0_93 = arith.constant 0 : index
    %c1_94 = arith.constant 1 : index
    %c192_95 = arith.constant 192 : index
    %93 = vector.load %arg6[%c0_93, %c1_94, %c192_95] : memref<9x9x256xf32, #tpu.memory_space<vmem>>, vector<8x8x64xf32>
    %94 = arith.maximumf %92, %93 : vector<8x8x64xf32>
    %c0_96 = arith.constant 0 : index
    %c0_97 = arith.constant 0 : index
    %c192_98 = arith.constant 192 : index
    %95 = vector.load %arg6[%c0_96, %c0_97, %c192_98] : memref<9x9x256xf32, #tpu.memory_space<vmem>>, vector<8x8x64xf32>
    %96 = arith.maximumf %94, %95 : vector<8x8x64xf32>
    %c0_99 = arith.constant 0 : index
    %c0_100 = arith.constant 0 : index
    %c0_101 = arith.constant 0 : index
    %c0_102 = arith.constant 0 : index
    %97 = vector.load %arg5[%c0_99, %c0_100, %c0_101, %c0_102] : memref<1x8x8x64xf32, #tpu.memory_space<vmem>>, vector<1x8x8x64xf32>
    %98 = vector.shape_cast %97 : vector<1x8x8x64xf32> to vector<8x8x64xf32>
    %99 = vector.shape_cast %96 : vector<8x8x64xf32> to vector<1x8x8x64xf32>
    tpu.vector_store %arg5[%c0_99, %c0_100, %c0_101, %c0_102], %99 {strides = array<i32>} : memref<1x8x8x64xf32, #tpu.memory_space<vmem>>, vector<1x8x8x64xf32>,
    return
  }
  func.func @transform_0(%arg0: i32) -> (i32, i32, i32, i32) {
    %c0_i32 = arith.constant 0 : i32
    %c0_i32_0 = arith.constant 0 : i32
    %c0_i32_1 = arith.constant 0 : i32
    %c0_i32_2 = arith.constant 0 : i32
    return %arg0, %c0_i32, %c0_i32_0, %c0_i32_1 : i32, i32, i32, i32
  }
  func.func @transform_1(%arg0: i32) -> (i32, i32, i32) {
    %c0_i32 = arith.constant 0 : i32
    %c0_i32_0 = arith.constant 0 : i32
    %c0_i32_1 = arith.constant 0 : i32
    %c0_i32_2 = arith.constant 0 : i32
    return %c0_i32, %c0_i32_0, %c0_i32_1 : i32, i32, i32
  }
  func.func @transform_2(%arg0: i32) -> (i32, i32) {
    %c0_i32 = arith.constant 0 : i32
    %c0_i32_0 = arith.constant 0 : i32
    %c0_i32_1 = arith.constant 0 : i32
    return %c0_i32, %c0_i32_0 : i32, i32
  }
  func.func @transform_3(%arg0: i32) -> (i32, i32) {
    %c0_i32 = arith.constant 0 : i32
    %c0_i32_0 = arith.constant 0 : i32
    %c0_i32_1 = arith.constant 0 : i32
    return %c0_i32, %c0_i32_0 : i32, i32
  }
  func.func @transform_4(%arg0: i32) -> (i32, i32, i32, i32) {
    %c0_i32 = arith.constant 0 : i32
    %c0_i32_0 = arith.constant 0 : i32
    %c0_i32_1 = arith.constant 0 : i32
    %c0_i32_2 = arith.constant 0 : i32
    return %arg0, %c0_i32, %c0_i32_0, %c0_i32_1 : i32, i32, i32, i32
  }
}

</mosaic_0001>

<bundles_post_ra>
// kernel: tile.13
= control target key start
LH: loop header
LB: loop body
LE: loop exit
PB: predicated region body
PF: predicated region fallthrough
CT: control target
= control target key end

     0   :  { %s22_s0 = inlined_call_operand.vmem [shape: f32[64], index: 0, kind: input, shape index: {}]   ;;  %s23_s1 = inlined_call_operand.vmem [shape: f32[4,64], index: 1, kind: output, shape index: {}]  }
   0x1   :  { %v4_v0 = vld [vmem:[%s22_s0] ss:$0 sm:$0xff] }
   0x2   :  { %5 = vst [vmem:[%s23_s1] sm:$0xf] %v4_v0 }

// kernel: tile.14
= control target key start
LH: loop header
LB: loop body
LE: loop exit
PB: predicated region body
PF: predicated region fallthrough
CT: control target
= control target key end

     0   :  { %s6_s8 = smov 3  ;;  %vm8_vm0 = vcmask 523264   ;;  %s31_s9 = smov 64   ;;  %vm15_vm1 = vcmask 1048064   ;;  %s51_s0 = inlined_call_operand.vmem [shape: f32[4,64], index: 0, kind: input, shape index: {}]   ;;  %s52_s1 = inlined_call_operand.vmem [shape: f32[1,256], index: 1, kind: output, shape index: {}]  }
   0x1   :  { %v4_v0 = vld [vmem:[%s51_s0] sm:$0xf]  ;;  %s11_s0 = smov 3 }
   0x2   :  { %5 = vst [vmem:[#allocation1] sm:$0xf] %v4_v0 }
   0x9   :  { %v12_v1 = vld [vmem:[#allocation1 + $0x1] ss:$2 sm:%s11_s0]   ;;  %v7_v2 = vld [vmem:[#allocation1] ss:$2 sm:%s6_s8]  }
   0xa   :  { %13 = vrot.lane.b32.xlu0 %v12_v1, %s31_s9  ;;  %9 = vst.msk [vmem:[#allocation0] ss:$8 sm:$0x3] %vm8_vm0, %v7_v2  }
  0x7c   :  { %v14_v3 = vpop.permute.xlu0 %13  }
  0x7d   :  { %16 = vst.msk [vmem:[#allocation0] ss:$8 sm:$0x3] %vm15_vm1, %v14_v3  }
  0x84   :  { %v19_v4 = vld [vmem:[#allocation0] sm:$0x1]  ;;  %v24_v5 = vld [vmem:[#allocation0 + $0x8] sm:$0x1] }
  0x85   :  { %22 = vst [vmem:[%s52_s1] sm:$0x1] %v19_v4 }
  0x86   :  { %29 = vst [vmem:[%s52_s1 + $0x1] sm:$0x1] %v24_v5 }

// kernel: cnn_stem_forward.1
= control target key start
LH: loop header
LB: loop body
LE: loop exit
PB: predicated region body
PF: predicated region fallthrough
CT: control target
= control target key end

     0   :  { %9 = vsyncpa [#allocation4], 0  ;;  %s4912_s0 = inlined_call_operand.vmem [shape: bf16[2,10,10,48], index: 0, kind: input, shape index: {}]   ;;  %s4913_s1 = inlined_call_operand.vmem [shape: bf16[9,48,256], index: 1, kind: input, shape index: {}]   ;;  %s4914_s2 = inlined_call_operand.vmem [shape: f32[1,256], index: 2, kind: input, shape index: {}]   ;;  %s4915_s3 = inlined_call_operand.vmem [shape: f32[1,256], index: 3, kind: input, shape index: {}]   ;;  %s4916_s4 = inlined_call_operand.hbm [shape: f32[2,8,8,64], index: 4, kind: output, shape index: {}]  }
   0x1   :  { %11 = vsyncpa [#allocation4 + $0x1], 0  ;;  %s3463_s15 = smov 0   ;;  %s3465_s16 = smov 0  }
   0x2   :  { %s3467_s17 = smov 0   ;;  %s3469_s18 = smov 0  }
   0x3 LB: > { %s3484_s19 = sadd.s32 4294967295, %s3432_s18   ;;  %s2765_s20 = sadd.s32 4294967294, %s3432_s18   ;;  %s3432_s18 = sphi %s3469_s18, %s4945_s18   ;;  %s3428_s17 = sphi %s3467_s17, %s4944_s17   ;;  %s3424_s16 = sphi %s3465_s16, %s4943_s16   ;;  %s3420_s15 = sphi %s3463_s15, %s4942_s15  }
   0x4   : > { %s3488_s21 = sadd.s32 1, %s3432_s18   ;;  %s113_s22 = sadd.s32 1, %s3428_s17 }
   0x5   : > { %s110_s23 = ssub.s32 %s3432_s18, %s3488_s21  ;;  %p123_p0 = scmp.ne.s32.totalorder %s3428_s17, %s3424_s16 }
   0x6   : > { %p111_p1 = scmp.eq.s32.totalorder %s110_s23, 0  ;;  %p124_p2 = scmp.eq.s32.totalorder %s3484_s19, 1 }
   0x7   : > { %p129_p3 = scmp.ne.s32.totalorder %s3424_s16, %s3420_s15  ;;  %p130_p4 = scmp.eq.s32.totalorder %s2765_s20, 1 }
   0x8   : > { %s3499_s24 = scalar_select %p111_p1, %s3428_s17, %s113_s22  }
   0x9   : > { %p3501_p5 = por %p124_p2, %p123_p0  ;;  %p3505_p6 = por %p130_p4, %p129_p3 }
   0xa   : > { %p2768_p7 = scmp.ge.s32.totalorder %s3432_s18, 1  ;;  %p165_p8 = scmp.lt.s32.totalorder %s3432_s18, 3 }
   0xc   : > { %p166_p9 = pnand %p2768_p7, %p165_p8 }
   0xe   : > { %169 = sbr.rel (%p166_p9) target bundleno = 728 (0x2d8), region = 36 }
  0x13   : > { %v2795_v0 = vld [vmem:[%s4913_s1 + $0x50] sm:$0xf]  ;;  %v3263_v1 = vld [vmem:[%s4913_s1 + $0x54] sm:$0xf0]  ;;  %v3262_v2 = vld [vmem:[%s4913_s1 + $0x54] sm:$0xf] }
  0x14   : > { %v2796_v3 = vor.u32 %v3263_v1, %v2795_v0  ;;  %v2797_v4 = vld [vmem:[%s4913_s1 + $0x58] sm:$0xf0]  ;;  %v2787_v5 = vld [vmem:[%s4913_s1 + $0x40] sm:$0xf]  ;;  %v3261_v6 = vld [vmem:[%s4913_s1 + $0x44] sm:$0xf0] }
  0x15   : > { %v2800_v7 = vor.u32 %v3262_v2, %v2797_v4  ;;  %v3260_v8 = vld [vmem:[%s4913_s1 + $0x44] sm:$0xf]  ;;  %v2789_v9 = vld [vmem:[%s4913_s1 + $0x48] sm:$0xf0]  ;;  %v2788_v10 = vor.u32 %v3261_v6, %v2787_v5  ;;  %v2779_v11 = vld [vmem:[%s4913_s1 + $0x30] sm:$0xf] }
  0x16   : > { %3315 = vmatpush.bf16.msra.mxu2 %v2796_v3  ;;  %401 = vmatpush.bf16.msra.mxu0 %v2796_v3  ;;  %v2792_v12 = vor.u32 %v3260_v8, %v2789_v9  ;;  %v3259_v13 = vld [vmem:[%s4913_s1 + $0x34] sm:$0xf0]  ;;  %v3258_v14 = vld [vmem:[%s4913_s1 + $0x34] sm:$0xf]  ;;  %p191_p10 = scmp.lt.s32.totalorder %s3484_s19, 1  ;;  %vm383_vm3 = vcmask 392192  }
  0x17   : > { %430 = vmatpush.bf16.msra.mxu1 %v2800_v7  ;;  %3318 = vmatpush.bf16.msra.mxu3 %v2800_v7  ;;  %v2781_v15 = vld [vmem:[%s4913_s1 + $0x38] sm:$0xf0]  ;;  %v3256_v16 = vld [vmem:[%s4913_s1 + $0x24] sm:$0xf]  ;;  %v2845_v17 = vld [vmem:[%s4913_s1 + $0x28] sm:$0xf0]  ;;  %v2780_v20 = vor.u32 %v3259_v13, %v2779_v11 }
  0x18   : > { %s192_s12 = scalar_select %p191_p10, %s3484_s19, 1  ;;  %v3268_v18 = vld [vmem:[%s4913_s1 + $0x84] sm:$0xf]  ;;  %v2891_v19 = vld [vmem:[%s4913_s1 + $0x88] sm:$0xf0]  ;;  %v2784_v22 = vor.u32 %v3258_v14, %v2781_v15  ;;  %v2848_v24 = vor.u32 %v3256_v16, %v2845_v17  ;;  %vm598_vm4 = vcmask 1042432  }
  0x19   : > { %v2843_v21 = vld [vmem:[%s4913_s1 + $0x20] sm:$0xf]  ;;  %v3257_v23 = vld [vmem:[%s4913_s1 + $0x24] sm:$0xf0]  ;;  %vm219_vm0 = vsmask.f32 3328  ;;  %v2894_v25 = vor.u32 %v3268_v18, %v2891_v19 }
  0x1a   : > { %3316 = vmatpush.bf16.msra.mxu2 %v2788_v10  ;;  %402 = vmatpush.bf16.msra.mxu0 %v2788_v10  ;;  %s3321_s28 = smul.u32 80, %s192_s12  ;;  %vm220_vm1 = vsmask.f32 7440  ;;  %v3254_v26 = vld [vmem:[%s4913_s1 + $0x14] sm:$0xf]  ;;  %v2844_v28 = vor.u32 %v3257_v23, %v2843_v21  ;;  %vm599_vm5 = vcmask 1046532  }
  0x1b   : > { %431 = vmatpush.bf16.msra.mxu1 %v2792_v12  ;;  %3319 = vmatpush.bf16.msra.mxu3 %v2792_v12  ;;  %v2837_v27 = vld [vmem:[%s4913_s1 + $0x18] sm:$0xf0]  ;;  %vm3599_vm2 = vmor %vm219_vm0, %vm220_vm1  ;;  %s188_s22 = sand.u32 1, %s3424_s16   ;;  %vm2669_vm7 = vcmask 523265   ;;  %vm2671_vm8 = vcmask 516096   ;;  %s3390_s12 = scalar_lea.hbm %s4916_s4, 128 }
  0x1c   : > { %s3570_s7 = scalar_lea.vmem %s4912_s0, %s3321_s28  ;;  %v2840_v41 = vor.u32 %v3254_v26, %v2837_v27  ;;  %vm3736_vm6 = vmor %vm598_vm4, %vm599_vm5  ;;  %s2769_s23 = sshll.u32 %s188_s22, 6 }
  0x1d   : > { %v201_v29 = vld [vmem:[%s3570_s7 + $0x20] sm:$0xf]  ;;  %v202_v30 = vld [vmem:[%s3570_s7 + $0x28] sm:$0xf]  ;;  %v3581_v31 = vld [vmem:[%s3570_s7 + $0x24] sm:$0x1] }
  0x1e   : > { %3317 = vmatpush.bf16.msra.mxu2 %v2780_v20  ;;  %403 = vmatpush.bf16.msra.mxu0 %v2780_v20  ;;  %v3584_v32 = vld [vmem:[%s3570_s7 + $0x2c] sm:$0x1]  ;;  %v279_v33 = vshrl.u32 %v201_v29, 16  ;;  %v282_v34 = vshll.u32 %v201_v29, 16  ;;  %v288_v35 = vshll.u32 %v3581_v31, 16  ;;  %v293_v36 = vshrl.u32 %v202_v30, 16 }
  0x1f   : > { %432 = vmatpush.bf16.msra.mxu1 %v2784_v22  ;;  %3320 = vmatpush.bf16.msra.mxu3 %v2784_v22  ;;  %v296_v37 = vshll.u32 %v202_v30, 16  ;;  %v302_v38 = vshll.u32 %v3584_v32, 16  ;;  %v197_v39 = vld [vmem:[%s3570_s7] sm:$0xf]  ;;  %v198_v40 = vld [vmem:[%s3570_s7 + $0x8] sm:$0xf] }
  0x20   : > { %v281_v42 = vrot.slane %v279_v33, 4  ;;  %v284_v43 = vrot.slane %v282_v34, 5  ;;  %v290_v44 = vrot.slane %v288_v35, 5  ;;  %v295_v45 = vrot.slane %v293_v36, 4  ;;  %v3591_v46 = vld [vmem:[%s3570_s7 + $0x4] sm:$0x1] }
  0x21   : > { %v298_v47 = vrot.slane %v296_v37, 5  ;;  %v304_v48 = vrot.slane %v302_v38, 5  ;;  %v3594_v49 = vld [vmem:[%s3570_s7 + $0xc] sm:$0x1]  ;;  %v223_v50 = vshrl.u32 %v197_v39, 16  ;;  %v226_v51 = vshll.u32 %v197_v39, 16 }
  0x22   : > { %521 = vmatpush.bf16.msrb.mxu2 %v2844_v28  ;;  %v285_v52 = vor.u32 %v284_v43, %v281_v42  ;;  %v232_v53 = vshll.u32 %v3591_v46, 16  ;;  %v237_v54 = vshrl.u32 %v198_v40, 16  ;;  %v240_v55 = vshll.u32 %v198_v40, 16  ;;  %v203_v61 = vld [vmem:[%s3570_s7 + $0x30] sm:$0xf]  ;;  %s4730_s27 = scalar_lea.vmem [#allocation3], %s2769_s23 }
  0x23   : > { %550 = vmatpush.bf16.msrb.mxu3 %v2848_v24  ;;  %728 = vmatpush.bf16.msrb.mxu1 %v2894_v25  ;;  %v299_v57 = vor.u32 %v298_v47, %v295_v45  ;;  %v225_v58 = vrot.slane %v223_v50, 4  ;;  %v228_v59 = vrot.slane %v226_v51, 5  ;;  %v246_v60 = vshll.u32 %v3594_v49, 16  ;;  %v3606_v4 = vld [vmem:[%s3570_s7 + $0x34] sm:$0x1]  ;;  %s3314_s28 = sshll.u32 %s3484_s19, 6 }
  0x24   : > { %v286_v62 = vrot.slane %v285_v52, 4  ;;  %v239_v63 = vrot.slane %v237_v54, 4  ;;  %v242_v0 = vrot.slane %v240_v55, 5  ;;  %v234_v3 = vrot.slane %v232_v53, 5  ;;  %v204_v8 = vld [vmem:[%s3570_s7 + $0x38] sm:$0xf]  ;;  %s2699_s5 = scalar_lea.hbm %s4916_s4, %s3314_s28 }
  0x25   : > { %v300_v1 = vrot.slane %v299_v57, 4  ;;  %v229_v2 = vor.u32 %v228_v59, %v225_v58  ;;  %v248_v7 = vrot.slane %v246_v60, 5  ;;  %v307_v9 = vshrl.u32 %v203_v61, 16  ;;  %v3614_v13 = vld [vmem:[%s3570_s7 + $0x3c] sm:$0x1]  ;;  %s2700_s6 = sshll.u32 %s4730_s27, 4  ;;  %s2701_s6 = int_to_ptr.vmem [resolvable:$true] %s2700_s6 }
  0x26   : > { %v291_v5 = vsel %vm3599_vm2, %v286_v62, %v290_v44  ;;  %v243_v6 = vor.u32 %v242_v0, %v239_v63  ;;  %v310_v14 = vshll.u32 %v203_v61, 16  ;;  %v316_v18 = vshll.u32 %v3606_v4, 16  ;;  %v199_v19 = vld [vmem:[%s3570_s7 + $0x10] sm:$0xf]  ;;  %v3621_v24 = vld [vmem:[%s3570_s7 + $0x14] sm:$0x1] }
  0x27   : > { %551 = vmatpush.bf16.msrb.mxu3 %v2840_v41  ;;  %v305_v10 = vsel %vm3599_vm2, %v300_v1, %v304_v48  ;;  %v345_v11 = vunpack.c.l.b16 %v291_v5  ;;  %v230_v12 = vrot.slane %v229_v2, 4  ;;  %v309_v17 = vrot.slane %v307_v9, 4  ;;  %v200_v29 = vld [vmem:[%s3570_s7 + $0x18] sm:$0xf]  ;;  %v3627_v36 = vld [vmem:[%s3570_s7 + $0x1c] sm:$0x1] }
  0x28   : > { %v346_v15 = vunpack.c.l.b16 %v305_v10  ;;  %v244_v16 = vrot.slane %v243_v6, 4  ;;  %v312_v21 = vrot.slane %v310_v14, 5  ;;  %v321_v22 = vshrl.u32 %v204_v8, 16  ;;  %v3266_v37 = vld [vmem:[%s4913_s1 + $0x74] sm:$0xf]  ;;  %s2702_s19 = sshll.u32 %s2699_s5, 4  ;;  %s2703_s19 = int_to_ptr.hbm [resolvable:$true] %s2702_s19 }
  0x29   : > { %v235_v20 = vsel %vm3599_vm2, %v230_v12, %v234_v3  ;;  %v324_v23 = vshll.u32 %v204_v8, 16  ;;  %v318_v28 = vrot.slane %v316_v18, 5  ;;  %v2883_v38 = vld [vmem:[%s4913_s1 + $0x78] sm:$0xf0]  ;;  %v330_v39 = vshll.u32 %v3614_v13, 16  ;;  %s2688_s8 = scalar_lea.sflag [#allocation4], %s188_s22 }
  0x2a   : > { %v351_v25 = vpack.c.b16 %v346_v15, %v345_v11  ;;  %v249_v26 = vsel %vm3599_vm2, %v244_v16, %v248_v7  ;;  %v341_v27 = vunpack.c.l.b16 %v235_v20  ;;  %v313_v33 = vor.u32 %v312_v21, %v309_v17  ;;  %v3252_v43 = vld [vmem:[%s4913_s1 + $0x4] sm:$0xf]  ;;  %v2829_v44 = vld [vmem:[%s4913_s1 + $0x8] sm:$0xf0]  ;;  %v2889_v51 = vld [vmem:[%s4913_s1 + $0x80] sm:$0xf] }
  0x2b   : > { %v342_v30 = vunpack.c.l.b16 %v249_v26  ;;  %v323_v34 = vrot.slane %v321_v22, 4  ;;  %v326_v35 = vrot.slane %v324_v23, 5  ;;  %v251_v40 = vshrl.u32 %v199_v19, 16  ;;  %v3269_v52 = vld [vmem:[%s4913_s1 + $0x84] sm:$0xf0]  ;;  %s3384_s9 = sshra.s32 %s2703_s19, 4  ;;  %s3385_s9 = int_to_ptr.hbm [resolvable:$true] %s3384_s9 }
  0x2c   : > { %2803 = vmatmul.msk.bf16.vlgmr.msra.gmra.mxu2 %vm383_vm3, %v351_v25  ;;  %2807 = vmatmul.msk.bf16.vlgmr.msra.gmra.mxu3 %vm383_vm3, %v351_v25  ;;  %v254_v41 = vshll.u32 %v199_v19, 16  ;;  %v260_v42 = vshll.u32 %v3621_v24, 16  ;;  %v314_v47 = vrot.slane %v313_v33, 4  ;;  %v265_v50 = vshrl.u32 %v200_v29, 16  ;;  %v2835_v57 = vld [vmem:[%s4913_s1 + $0x10] sm:$0xf]  ;;  %p3391_p0 = scmp.lt.s32.totalorder %s3385_s9, %s4916_s4 }
  0x2d   : > { %v349_v45 = vpack.c.b16 %v342_v30, %v341_v27  ;;  %v327_v48 = vor.u32 %v326_v35, %v323_v34  ;;  %v332_v53 = vrot.slane %v330_v39, 5  ;;  %v253_v54 = vrot.slane %v251_v40, 4  ;;  %v3255_v62 = vld [vmem:[%s4913_s1 + $0x14] sm:$0xf0]  ;;  %v3264_v3 = vld [vmem:[%s4913_s1 + $0x64] sm:$0xf] }
  0x2e   : > { %v256_v55 = vrot.slane %v254_v41, 5  ;;  %v262_v59 = vrot.slane %v260_v42, 5  ;;  %v267_v60 = vrot.slane %v265_v50, 4  ;;  %v268_v61 = vshll.u32 %v200_v29, 16  ;;  %v2875_v5 = vld [vmem:[%s4913_s1 + $0x68] sm:$0xf0] }
  0x2f   : > { %2805 = vmatmul.msk.bf16.vlgmr.msra.gmra.mxu1 %vm383_vm3, %v349_v45  ;;  %2801 = vmatmul.msk.bf16.vlgmr.msra.gmra.mxu0 %vm383_vm3, %v349_v45  ;;  %v328_v58 = vrot.slane %v327_v48, 4  ;;  %v319_v63 = vsel %vm3599_vm2, %v314_v47, %v318_v28  ;;  %v274_v1 = vshll.u32 %v3627_v36, 16  ;;  %v2886_v2 = vor.u32 %v3266_v37, %v2883_v38  ;;  %v2827_v10 = vld [vmem:[%s4913_s1] sm:$0xf]  ;;  %v3253_v11 = vld [vmem:[%s4913_s1 + $0x4] sm:$0xf0] }
  0x30   : > { %v257_v0 = vor.u32 %v256_v55, %v253_v54  ;;  %v270_v7 = vrot.slane %v268_v61, 5  ;;  %v2832_v8 = vor.u32 %v3252_v43, %v2829_v44  ;;  %v2890_v9 = vor.u32 %v3269_v52, %v2889_v51  ;;  %v3278_v18 = vld [vmem:[%s4913_s1 + $0xb4] sm:$0xf]  ;;  %v2953_v19 = vld [vmem:[%s4913_s1 + $0xb8] sm:$0xf0]  ;;  %s3386_s10 = scalar_lea.hbm %s3385_s9, 64 }
  0x31   : > { %v333_v6 = vsel %vm3599_vm2, %v328_v58, %v332_v53  ;;  %v276_v14 = vrot.slane %v274_v1, 5  ;;  %729 = vmatpush.bf16.msrb.mxu1 %v2886_v2  ;;  %v2836_v15 = vor.u32 %v3255_v62, %v2835_v57  ;;  %v2878_v17 = vor.u32 %v3264_v3, %v2875_v5  ;;  %v2881_v20 = vld [vmem:[%s4913_s1 + $0x70] sm:$0xf]  ;;  %v3267_v26 = vld [vmem:[%s4913_s1 + $0x74] sm:$0xf0]  ;;  %p3387_p11 = scmp.ne.s32.totalorder %s3385_s9, %s3386_s10  ;;  %p3392_p1 = scmp.lt.s32.totalorder %s3390_s12, %s3386_s10 }
  0x32   : > { %v258_v12 = vrot.slane %v257_v0, 4  ;;  %v271_v16 = vor.u32 %v270_v7, %v267_v60  ;;  %552 = vmatpush.bf16.msrb.mxu3 %v2832_v8  ;;  %699 = vmatpush.bf16.msrb.mxu0 %v2890_v9  ;;  %v347_v21 = vunpack.c.l.b16 %v319_v63  ;;  %v348_v22 = vunpack.c.l.b16 %v333_v6  ;;  %v2873_v28 = vld [vmem:[%s4913_s1 + $0x60] sm:$0xf]  ;;  %v3265_v29 = vld [vmem:[%s4913_s1 + $0x64] sm:$0xf0] }
  0x33   : > { %522 = vmatpush.bf16.msrb.mxu2 %v2836_v15  ;;  %v2828_v25 = vor.u32 %v3253_v11, %v2827_v10  ;;  %v2956_v30 = vor.u32 %v3278_v18, %v2953_v19  ;;  %v2882_v33 = vor.u32 %v3267_v26, %v2881_v20  ;;  %v3284_v34 = vld [vmem:[%s4913_s1 + $0xe4] sm:$0xf]  ;;  %v3007_v35 = vld [vmem:[%s4913_s1 + $0xe8] sm:$0xf0]  ;;  %v2951_v37 = vld [vmem:[%s4913_s1 + $0xb0] sm:$0xf]  ;;  %v2874_v45 = vor.u32 %v3265_v29, %v2873_v28  ;;  %p3388_p12 = pnand %p3387_p11, %p3501_p5  ;;  %p3393_p2 = por %p3392_p1, %p3391_p0 }
  0x34   : > { %v263_v23 = vsel %vm3599_vm2, %v258_v12, %v262_v59  ;;  %v272_v27 = vrot.slane %v271_v16, 4  ;;  %v3010_v40 = vor.u32 %v3284_v34, %v3007_v35  ;;  %v3279_v41 = vld [vmem:[%s4913_s1 + $0xb4] sm:$0xf0]  ;;  %v352_v42 = vpack.c.b16 %v348_v22, %v347_v21  ;;  %v574_v48 = vld [vmem:[%s3570_s7] sm:$0xe] }
  0x35   : > { %730 = vmatpush.bf16.msrb.mxu1 %v2878_v17  ;;  %v343_v39 = vunpack.c.l.b16 %v263_v23  ;;  %v2952_v44 = vor.u32 %v3279_v41, %v2951_v37  ;;  %v575_v50 = vld [vmem:[%s3570_s7 + $0x8] sm:$0xe]  ;;  %v603_v51 = vrot.slane %v3591_v46, 5  ;;  %v607_v52 = vrot.slane %v3594_v49, 5  ;;  %v3276_v55 = vld [vmem:[%s4913_s1 + $0xa4] sm:$0xf]  ;;  %p3389_p13 = pneg %p3388_p12 }
  0x36   : > { %v277_v38 = vsel %vm3599_vm2, %v272_v27, %v276_v14  ;;  %880 = vmatpush.bf16.msra.mxu3 %v2956_v30  ;;  %700 = vmatpush.bf16.msrb.mxu0 %v2882_v33  ;;  %v2857_v53 = vrot.slane %v574_v48, 9  ;;  %v2858_v54 = vrot.slane %v575_v50, 9  ;;  %v2945_v46 = vld [vmem:[%s4913_s1 + $0xa8] sm:$0xf0]  ;;  %v3005_v49 = vld [vmem:[%s4913_s1 + $0xe0] sm:$0xf] }
  0x37   : > { %v344_v43 = vunpack.c.l.b16 %v277_v38  ;;  %523 = vmatpush.bf16.msrb.mxu2 %v2828_v25  ;;  %v2948_v57 = vor.u32 %v3276_v55, %v2945_v46  ;;  %v3285_v58 = vld [vmem:[%s4913_s1 + $0xe4] sm:$0xf0]  ;;  %v3282_v59 = vld [vmem:[%s4913_s1 + $0xd4] sm:$0xf]  ;;  %v2999_v60 = vld [vmem:[%s4913_s1 + $0xd8] sm:$0xf0]  ;;  %p3394_p3 = pnand %p3393_p2, %p3389_p13 }
  0x38   : > { %v3006_v62 = vor.u32 %v3285_v58, %v3005_v49  ;;  %v3002_v63 = vor.u32 %v3282_v59, %v2999_v60  ;;  %v2811_v0 = vld [vmem:[%s3570_s7] sm:$0xf]  ;;  %v3248_v1 = vld [vmem:[%s3570_s7 + $0x4] sm:$0xf0]  ;;  %v604_v2 = vsel %vm3736_vm6, %v2857_v53, %v603_v51  ;;  %v608_v3 = vsel %vm3736_vm6, %v2858_v54, %v607_v52  ;;  %v576_v18 = vld [vmem:[%s3570_s7 + $0x10] sm:$0xe] }
  0x39   : > { %1143 = vmatpush.bf16.msra.mxu1 %v3010_v40  ;;  %v350_v47 = vpack.c.b16 %v344_v43, %v343_v39  ;;  %v2812_v5 = vor.u32 %v3248_v1, %v2811_v0  ;;  %v640_v6 = vunpack.c.l.b16 %v604_v2  ;;  %v641_v7 = vunpack.c.l.b16 %v608_v3  ;;  %v578_v8 = vld [vmem:[%s3570_s7 + $0x20] sm:$0xe]  ;;  %v579_v9 = vld [vmem:[%s3570_s7 + $0x28] sm:$0xe]  ;;  %v577_v19 = vld [vmem:[%s3570_s7 + $0x18] sm:$0xe] }
  0x3a   : > { %701 = vmatpush.bf16.msrb.mxu0 %v2874_v45  ;;  %881 = vmatpush.bf16.msra.mxu3 %v2948_v57  ;;  %v2861_v10 = vrot.slane %v578_v8, 9  ;;  %v619_v11 = vrot.slane %v3581_v31, 5  ;;  %v2862_v12 = vrot.slane %v579_v9, 9  ;;  %v623_v14 = vrot.slane %v3584_v32, 5  ;;  %v2943_v26 = vld [vmem:[%s4913_s1 + $0xa0] sm:$0xf] }
  0x3b   : > { %851 = vmatpush.bf16.msra.mxu2 %v2952_v44  ;;  %v648_v17 = vpack.c.b16 %v641_v7, %v640_v6  ;;  %v2859_v31 = vrot.slane %v576_v18, 9  ;;  %v611_v23 = vrot.slane %v3621_v24, 5  ;;  %v2860_v32 = vrot.slane %v577_v19, 9  ;;  %v3277_v27 = vld [vmem:[%s4913_s1 + $0xa4] sm:$0xf0] }
  0x3c   : > { %2804 = vmatmul.msk.bf16.gmra.mxu2 %vm383_vm3, %v352_v42  ;;  %2808 = vmatmul.msk.bf16.gmra.mxu3 %vm383_vm3, %v352_v42  ;;  %v620_v15 = vsel %vm3736_vm6, %v2861_v10, %v619_v11  ;;  %v624_v16 = vsel %vm3736_vm6, %v2862_v12, %v623_v14  ;;  %v615_v25 = vrot.slane %v3627_v36, 5  ;;  %v3274_v24 = vld [vmem:[%s4913_s1 + $0x94] sm:$0xf]  ;;  %v2944_v28 = vor.u32 %v3277_v27, %v2943_v26  ;;  %v2937_v36 = vld [vmem:[%s4913_s1 + $0x98] sm:$0xf0] }
  0x3d   : > { %1144 = vmatpush.bf16.msra.mxu1 %v3002_v63  ;;  %v644_v20 = vunpack.c.l.b16 %v620_v15  ;;  %v645_v21 = vunpack.c.l.b16 %v624_v16  ;;  %v2997_v29 = vld [vmem:[%s4913_s1 + $0xd0] sm:$0xf]  ;;  %v3283_v30 = vld [vmem:[%s4913_s1 + $0xd4] sm:$0xf0]  ;;  %v2940_v33 = vor.u32 %v3274_v24, %v2937_v36  ;;  %v612_v38 = vsel %vm3736_vm6, %v2859_v31, %v611_v23  ;;  %v2819_v60 = vld [vmem:[%s3570_s7 + $0x20] sm:$0xf] }
  0x3e   : > { %1114 = vmatpush.bf16.msra.mxu0 %v3006_v62  ;;  %v2998_v34 = vor.u32 %v3283_v30, %v2997_v29  ;;  %v2815_v35 = vld [vmem:[%s3570_s7 + $0x10] sm:$0xf]  ;;  %v3249_v37 = vld [vmem:[%s3570_s7 + $0x14] sm:$0xf0]  ;;  %v616_v39 = vsel %vm3736_vm6, %v2860_v32, %v615_v25  ;;  %v642_v41 = vunpack.c.l.b16 %v612_v38  ;;  %v631_v50 = vrot.slane %v3614_v13, 5 }
  0x3f   : > { %2806 = vmatmul.msk.bf16.gmra.mxu1 %vm383_vm3, %v350_v47  ;;  %2802 = vmatmul.msk.bf16.gmra.mxu0 %vm383_vm3, %v350_v47  ;;  %v650_v22 = vpack.c.b16 %v645_v21, %v644_v20  ;;  %v2816_v40 = vor.u32 %v3249_v37, %v2815_v35  ;;  %v643_v42 = vunpack.c.l.b16 %v616_v39  ;;  %v580_v43 = vld [vmem:[%s3570_s7 + $0x30] sm:$0xe]  ;;  %v581_v44 = vld [vmem:[%s3570_s7 + $0x38] sm:$0xe]  ;;  %v627_v47 = vrot.slane %v3606_v4, 5 }
  0x40   : > { %852 = vmatpush.bf16.msra.mxu2 %v2944_v28  ;;  %882 = vmatpush.bf16.msra.mxu3 %v2940_v33  ;;  %v2863_v45 = vrot.slane %v580_v43, 9  ;;  %v2864_v48 = vrot.slane %v581_v44, 9  ;;  %v3280_v4 = vld [vmem:[%s4913_s1 + $0xc4] sm:$0xf]  ;;  %v2991_v13 = vld [vmem:[%s4913_s1 + $0xc8] sm:$0xf0] }
  0x41   : > { %v649_v53 = vpack.c.b16 %v643_v42, %v642_v41  ;;  %v2935_v49 = vld [vmem:[%s4913_s1 + $0x90] sm:$0xf]  ;;  %v2994_v57 = vor.u32 %v3280_v4, %v2991_v13  ;;  %v3275_v58 = vld [vmem:[%s4913_s1 + $0x94] sm:$0xf0]  ;;  %v3250_v62 = vld [vmem:[%s3570_s7 + $0x24] sm:$0xf0] }
  0x42   : > { %1115 = vmatpush.bf16.msra.mxu0 %v2998_v34  ;;  %v628_v51 = vsel %vm3736_vm6, %v2863_v45, %v627_v47  ;;  %v632_v52 = vsel %vm3736_vm6, %v2864_v48, %v631_v50  ;;  %v2936_v59 = vor.u32 %v3275_v58, %v2935_v49  ;;  %v2820_v63 = vor.u32 %v3250_v62, %v2819_v60  ;;  %v2965_v0 = vld [vmem:[%s3570_s7 + $0x8] sm:$0xf]  ;;  %v2967_v1 = vld [vmem:[%s3570_s7 + $0x10] sm:$0xf]  ;;  %v3290_v2 = vld [vmem:[%s4913_s1 + $0x114] sm:$0xf] }
  0x43   : > { %v646_v54 = vunpack.c.l.b16 %v628_v51  ;;  %v647_v55 = vunpack.c.l.b16 %v632_v52  ;;  %1145 = vmatpush.bf16.msra.mxu1 %v2994_v57  ;;  %v3061_v3 = vld [vmem:[%s4913_s1 + $0x118] sm:$0xf0]  ;;  %v3281_v7 = vld [vmem:[%s4913_s1 + $0xc4] sm:$0xf0]  ;;  %v3300_v8 = vld [vmem:[%s4913_s1 + $0x144] sm:$0xf] }
  0x44   : > { %853 = vmatpush.bf16.msra.mxu2 %v2936_v59  ;;  %v3064_v6 = vor.u32 %v3290_v2, %v3061_v3  ;;  %v3123_v9 = vld [vmem:[%s4913_s1 + $0x148] sm:$0xf0]  ;;  %v937_v10 = vshrl.u32 %v2965_v0, 16  ;;  %v3059_v14 = vld [vmem:[%s4913_s1 + $0x110] sm:$0xf]  ;;  %v940_v16 = vshll.u32 %v2965_v0, 16 }
  0x45   : > { %v651_v46 = vpack.c.b16 %v647_v55, %v646_v54  ;;  %v3126_v12 = vor.u32 %v3300_v8, %v3123_v9  ;;  %v3291_v15 = vld [vmem:[%s4913_s1 + $0x114] sm:$0xf0]  ;;  %v954_v18 = vshll.u32 %v2967_v1, 16  ;;  %v2823_v20 = vld [vmem:[%s3570_s7 + $0x30] sm:$0xf] }
  0x46   : > { %v3060_v19 = vor.u32 %v3291_v15, %v3059_v14  ;;  %v3251_v21 = vld [vmem:[%s3570_s7 + $0x34] sm:$0xf0]  ;;  %v942_v31 = vrot.slane %v940_v16, 5  ;;  %v3845_v25 = vld [vmem:[%s3570_s7 + $0xc] sm:$0x1] }
  0x47   : > { %v956_v32 = vrot.slane %v954_v18, 5  ;;  %v3848_v26 = vld [vmem:[%s3570_s7 + $0x14] sm:$0x1]  ;;  %v2824_v27 = vor.u32 %v3251_v21, %v2823_v20  ;;  %v946_v28 = vshll.u32 %v3845_v25, 16  ;;  %v3288_v37 = vld [vmem:[%s4913_s1 + $0x104] sm:$0xf] }
  0x48   : > { %v960_v29 = vshll.u32 %v3848_v26, 16  ;;  %v3053_v38 = vld [vmem:[%s4913_s1 + $0x108] sm:$0xf0]  ;;  %v3121_v39 = vld [vmem:[%s4913_s1 + $0x140] sm:$0xf] }
  0x49   : > { %v948_v33 = vrot.slane %v946_v28, 5  ;;  %v3301_v41 = vld [vmem:[%s4913_s1 + $0x144] sm:$0xf0]  ;;  %v2969_v42 = vld [vmem:[%s3570_s7 + $0x18] sm:$0xf] }
  0x4a   : > { %v962_v35 = vrot.slane %v960_v29, 5  ;;  %v2971_v43 = vld [vmem:[%s3570_s7 + $0x20] sm:$0xf]  ;;  %v3122_v44 = vor.u32 %v3301_v41, %v3121_v39  ;;  %v2919_v45 = vld [vmem:[%s3570_s7 + $0x8] sm:$0xf]  ;;  %v965_v51 = vshrl.u32 %v2969_v42, 16 }
  0x4b   : > { %v3270_v50 = vld [vmem:[%s3570_s7 + $0xc] sm:$0xf0]  ;;  %v968_v52 = vshll.u32 %v2969_v42, 16  ;;  %v982_v54 = vshll.u32 %v2971_v43, 16  ;;  %v3877_v13 = vld [vmem:[%s3570_s7 + $0x1c] sm:$0x1] }
  0x4c   : > { %2849 = vmatmul.msk.bf16.vlgmr.msrb.gmra.mxu2 %vm383_vm3, %v2812_v5  ;;  %2853 = vmatmul.msk.bf16.vlgmr.msrb.gmra.mxu3 %vm383_vm3, %v2812_v5  ;;  %v2989_v5 = vld [vmem:[%s4913_s1 + $0xc0] sm:$0xf]  ;;  %v2920_v55 = vor.u32 %v3270_v50, %v2919_v45  ;;  %v967_v49 = vrot.slane %v965_v51, 4  ;;  %v3880_v60 = vld [vmem:[%s3570_s7 + $0x24] sm:$0x1]  ;;  %v974_v62 = vshll.u32 %v3877_v13, 16 }
  0x4d   : > { %v2990_v11 = vor.u32 %v3281_v7, %v2989_v5  ;;  %1334 = vmatpush.bf16.msrb.mxu3 %v3064_v6  ;;  %1305 = vmatpush.bf16.msrb.mxu2 %v3060_v19  ;;  %v970_v57 = vrot.slane %v968_v52, 5  ;;  %v984_v59 = vrot.slane %v982_v54, 5  ;;  %v988_v2 = vshll.u32 %v3880_v60, 16  ;;  %v3298_v3 = vld [vmem:[%s4913_s1 + $0x134] sm:$0xf] }
  0x4e   : > { %v3115_v5 = vld [vmem:[%s4913_s1 + $0x138] sm:$0xf0]  ;;  %v976_v7 = vrot.slane %v974_v62, 5  ;;  %v2973_v8 = vld [vmem:[%s3570_s7 + $0x28] sm:$0xf] }
  0x4f   : > { %2899 = vmatmul.msk.bf16.vlgmr.msrb.gmra.mxu1 %vm383_vm3, %v648_v17  ;;  %2895 = vmatmul.msk.bf16.vlgmr.msrb.gmra.mxu0 %vm383_vm3, %v648_v17  ;;  %v951_v17 = vshrl.u32 %v2967_v1, 16  ;;  %v971_v0 = vor.u32 %v970_v57, %v967_v49  ;;  %v3118_v6 = vor.u32 %v3298_v3, %v3115_v5  ;;  %v3051_v9 = vld [vmem:[%s4913_s1 + $0x100] sm:$0xf]  ;;  %v990_v14 = vrot.slane %v988_v2, 5  ;;  %v2975_v16 = vld [vmem:[%s3570_s7 + $0x30] sm:$0xf] }
  0x50   : > { %1116 = vmatpush.bf16.msra.mxu0 %v2990_v11  ;;  %1486 = vmatpush.bf16.msrb.mxu1 %v3126_v12  ;;  %v996_v18 = vshll.u32 %v2973_v8, 16  ;;  %v1007_v21 = vshrl.u32 %v2975_v16, 16  ;;  %v3045_v29 = vld [vmem:[%s4913_s1 + $0xf8] sm:$0xf0]  ;;  %v3921_v39 = vld [vmem:[%s3570_s7 + $0x2c] sm:$0x1] }
  0x51   : > { %v953_v23 = vrot.slane %v951_v17, 4  ;;  %v972_v11 = vrot.slane %v971_v0, 4  ;;  %v993_v17 = vshrl.u32 %v2973_v8, 16  ;;  %v2977_v50 = vld [vmem:[%s3570_s7 + $0x38] sm:$0xf] }
  0x52   : > { %v3296_v51 = vld [vmem:[%s4913_s1 + $0x124] sm:$0xf]  ;;  %v3107_v52 = vld [vmem:[%s4913_s1 + $0x128] sm:$0xf0]  ;;  %v1021_v49 = vshrl.u32 %v2977_v50, 16  ;;  %v1024_v57 = vshll.u32 %v2977_v50, 16 }
  0x53   : > { %v957_v36 = vor.u32 %v956_v32, %v953_v23  ;;  %v977_v19 = vsel %vm3599_vm2, %v972_v11, %v976_v7  ;;  %v3271_v23 = vld [vmem:[%s3570_s7 + $0x1c] sm:$0xf0]  ;;  %v995_v32 = vrot.slane %v993_v17, 4  ;;  %v3043_v0 = vld [vmem:[%s4913_s1 + $0xf0] sm:$0xf] }
  0x54   : > { %1457 = vmatpush.bf16.msrb.mxu0 %v3122_v44  ;;  %1487 = vmatpush.bf16.msrb.mxu1 %v3118_v6  ;;  %v1002_v44 = vshll.u32 %v3921_v39, 16  ;;  %v2927_v2 = vld [vmem:[%s3570_s7 + $0x28] sm:$0xf]  ;;  %v3272_v3 = vld [vmem:[%s3570_s7 + $0x2c] sm:$0xf0]  ;;  %v1023_v6 = vrot.slane %v1021_v49, 4 }
  0x55   : > { %v958_v34 = vrot.slane %v957_v36, 4  ;;  %v3286_v36 = vld [vmem:[%s4913_s1 + $0xf4] sm:$0xf]  ;;  %v1026_v7 = vrot.slane %v1024_v57, 5 }
  0x57   : > { %v963_v48 = vsel %vm3599_vm2, %v958_v34, %v962_v35  ;;  %v1009_v34 = vrot.slane %v1007_v21, 4 }
  0x58   : > { %v1056_v4 = vunpack.c.l.b16 %v963_v48 }
  0x5c   : > { %2850 = vmatmul.msk.bf16.gmra.mxu2 %vm383_vm3, %v2816_v40  ;;  %2854 = vmatmul.msk.bf16.gmra.mxu3 %vm383_vm3, %v2816_v40  ;;  %v3056_v40 = vor.u32 %v3288_v37, %v3053_v38  ;;  %v3048_v37 = vor.u32 %v3286_v36, %v3045_v29  ;;  %v3299_v38 = vld [vmem:[%s4913_s1 + $0x134] sm:$0xf0] }
  0x5e   : > { %1335 = vmatpush.bf16.msrb.mxu3 %v3056_v40  ;;  %v3924_v40 = vld [vmem:[%s3570_s7 + $0x34] sm:$0x1] }
  0x5f   : > { %2900 = vmatmul.msk.bf16.gmra.mxu1 %vm383_vm3, %v649_v53  ;;  %2896 = vmatmul.msk.bf16.gmra.mxu0 %vm383_vm3, %v649_v53  ;;  %v979_v53 = vshrl.u32 %v2971_v43, 16 }
  0x61   : > { %v981_v58 = vrot.slane %v979_v53, 4  ;;  %v1004_v53 = vrot.slane %v1002_v44, 5  ;;  %v3231_v44 = vld [vmem:[%s4913_s1 + $0x1a8] sm:$0xf0] }
  0x62   : > { %1336 = vmatpush.bf16.msrb.mxu3 %v3048_v37 }
  0x63   : > { %v985_v1 = vor.u32 %v984_v59, %v981_v58 }
  0x65   : > { %v986_v12 = vrot.slane %v985_v1, 4  ;;  %v3287_v1 = vld [vmem:[%s4913_s1 + $0xf4] sm:$0xf0] }
  0x66   : > { %v3044_v5 = vor.u32 %v3287_v1, %v3043_v0  ;;  %v1213_v1 = vrot.slane %v3848_v26, 5 }
  0x67   : > { %v991_v20 = vsel %vm3599_vm2, %v986_v12, %v990_v14  ;;  %v3953_v14 = vld [vmem:[%s3570_s7 + $0x3c] sm:$0x1] }
  0x68   : > { %v1058_v28 = vunpack.c.l.b16 %v991_v20  ;;  %v1030_v20 = vshll.u32 %v3953_v14, 16 }
  0x6a   : > { %v1032_v36 = vrot.slane %v1030_v20, 5 }
  0x6c   : > { %2851 = vmatmul.msk.bf16.gmra.mxu2 %vm383_vm3, %v2820_v63  ;;  %2855 = vmatmul.msk.bf16.gmra.mxu3 %vm383_vm3, %v2820_v63 }
  0x6f   : > { %2901 = vmatmul.msk.bf16.gmra.mxu1 %vm383_vm3, %v650_v22  ;;  %2897 = vmatmul.msk.bf16.gmra.mxu0 %vm383_vm3, %v650_v22  ;;  %v939_v22 = vrot.slane %v937_v10, 4  ;;  %v3289_v10 = vld [vmem:[%s4913_s1 + $0x104] sm:$0xf0] }
  0x70   : > { %v3052_v15 = vor.u32 %v3289_v10, %v3051_v9  ;;  %v2928_v10 = vor.u32 %v3272_v3, %v2927_v2 }
  0x71   : > { %v943_v24 = vor.u32 %v942_v31, %v939_v22  ;;  %v1010_v22 = vshll.u32 %v2975_v16, 16  ;;  %v2923_v31 = vld [vmem:[%s3570_s7 + $0x18] sm:$0xf]  ;;  %v1027_v16 = vor.u32 %v1026_v7, %v1023_v6 }
  0x72   : > { %1306 = vmatpush.bf16.msrb.mxu2 %v3052_v15  ;;  %v3956_v15 = vld [vmem:[%s3570_s7 + $0x44] sm:$0x1] }
  0x73   : > { %v944_v30 = vrot.slane %v943_v24, 4  ;;  %v1057_v24 = vunpack.c.l.b16 %v977_v19  ;;  %v1012_v35 = vrot.slane %v1010_v22, 5  ;;  %v1044_v22 = vshll.u32 %v3956_v15, 16 }
  0x75   : > { %v949_v47 = vsel %vm3599_vm2, %v944_v30, %v948_v33  ;;  %v3113_v30 = vld [vmem:[%s4913_s1 + $0x130] sm:$0xf]  ;;  %v2924_v33 = vor.u32 %v3271_v23, %v2923_v31  ;;  %v1064_v43 = vpack.c.b16 %v1058_v28, %v1057_v24  ;;  %v1013_v45 = vor.u32 %v1012_v35, %v1009_v34  ;;  %v3177_v24 = vld [vmem:[%s4913_s1 + $0x178] sm:$0xf0]  ;;  %v3105_v28 = vld [vmem:[%s4913_s1 + $0x120] sm:$0xf] }
  0x76   : > { %v3114_v41 = vor.u32 %v3299_v38, %v3113_v30  ;;  %1307 = vmatpush.bf16.msrb.mxu2 %v3044_v5  ;;  %v1028_v31 = vrot.slane %v1027_v16, 4  ;;  %v1046_v30 = vrot.slane %v1044_v22, 5  ;;  %v3297_v34 = vld [vmem:[%s4913_s1 + $0x124] sm:$0xf0] }
  0x77   : > { %v1014_v54 = vrot.slane %v1013_v45, 4  ;;  %v3106_v35 = vor.u32 %v3297_v34, %v3105_v28  ;;  %v2931_v45 = vld [vmem:[%s3570_s7 + $0x38] sm:$0xf] }
  0x78   : > { %1458 = vmatpush.bf16.msrb.mxu0 %v3114_v41  ;;  %v1033_v41 = vsel %vm3599_vm2, %v1028_v31, %v1032_v36  ;;  %v3021_v28 = vld [vmem:[%s3570_s7 + $0x18] sm:$0xe]  ;;  %v3022_v36 = vld [vmem:[%s3570_s7 + $0x20] sm:$0xe] }
  0x79   : > { %v3029_v34 = vrot.slane %v3021_v28, 9 }
  0x7c   : > { %2852 = vmatmul.msk.bf16.gmra.mxu2 %vm383_vm3, %v2824_v27  ;;  %2856 = vmatmul.msk.bf16.gmra.mxu3 %vm383_vm3, %v2824_v27  ;;  %v998_v27 = vrot.slane %v996_v18, 5 }
  0x7d   : > { %1459 = vmatpush.bf16.msrb.mxu0 %v3106_v35  ;;  %v3310_v35 = vld [vmem:[%s4913_s1 + $0x194] sm:$0xf] }
  0x7e   : > { %v999_v42 = vor.u32 %v998_v27, %v995_v32  ;;  %v3306_v27 = vld [vmem:[%s4913_s1 + $0x174] sm:$0xf] }
  0x7f   : > { %2902 = vmatmul.msk.bf16.gmra.mxu1 %vm383_vm3, %v651_v46  ;;  %2898 = vmatmul.msk.bf16.gmra.mxu0 %vm383_vm3, %v651_v46  ;;  %v1055_v46 = vunpack.c.l.b16 %v949_v47  ;;  %v1016_v47 = vshll.u32 %v3924_v40, 16 }
  0x80   : > { %v1000_v48 = vrot.slane %v999_v42, 4 }
  0x81   : > { %v1063_v63 = vpack.c.b16 %v1056_v4, %v1055_v46  ;;  %v3110_v46 = vor.u32 %v3296_v51, %v3107_v52  ;;  %v2979_v4 = vld [vmem:[%s3570_s7 + $0x40] sm:$0xf]  ;;  %v1061_v52 = vunpack.c.l.b16 %v1033_v41  ;;  %v3223_v41 = vld [vmem:[%s4913_s1 + $0x198] sm:$0xf0] }
  0x82   : > { %v1005_v58 = vsel %vm3599_vm2, %v1000_v48, %v1004_v53  ;;  %v1035_v62 = vshrl.u32 %v2979_v4, 16 }
  0x83   : > { %1488 = vmatpush.bf16.msrb.mxu1 %v3110_v46  ;;  %v1059_v8 = vunpack.c.l.b16 %v1005_v58  ;;  %v3020_v46 = vld [vmem:[%s3570_s7 + $0x10] sm:$0xe] }
  0x84   : > { %v1037_v11 = vrot.slane %v1035_v62, 4  ;;  %v3307_v62 = vld [vmem:[%s4913_s1 + $0x174] sm:$0xf0]  ;;  %v3028_v0 = vrot.slane %v3020_v46, 9 }
  0x8c   : > { %2957 = vmatmul.msk.bf16.vlgmr.msra.gmra.mxu2 %vm383_vm3, %v2920_v55  ;;  %2961 = vmatmul.msk.bf16.vlgmr.msra.gmra.mxu3 %vm383_vm3, %v2920_v55  ;;  %v1018_v55 = vrot.slane %v1016_v47, 5  ;;  %v3273_v47 = vld [vmem:[%s3570_s7 + $0x3c] sm:$0xf0] }
  0x8e   : > { %v1019_v59 = vsel %vm3599_vm2, %v1014_v54, %v1018_v55  ;;  %v2932_v54 = vor.u32 %v3273_v47, %v2931_v45  ;;  %v3019_v55 = vld [vmem:[%s3570_s7 + $0x8] sm:$0xe]  ;;  %v3226_v45 = vor.u32 %v3310_v35, %v3223_v41 }
  0x8f   : > { %3015 = vmatmul.msk.bf16.vlgmr.msra.gmra.mxu1 %vm383_vm3, %v1063_v63  ;;  %3011 = vmatmul.msk.bf16.vlgmr.msra.gmra.mxu0 %vm383_vm3, %v1063_v63  ;;  %v1038_v63 = vshll.u32 %v2979_v4, 16  ;;  %v1060_v9 = vunpack.c.l.b16 %v1019_v59  ;;  %v3027_v58 = vrot.slane %v3019_v55, 9  ;;  %v3175_v59 = vld [vmem:[%s4913_s1 + $0x170] sm:$0xf] }
  0x90   : > { %v3176_v2 = vor.u32 %v3307_v62, %v3175_v59 }
  0x91   : > { %v1040_v12 = vrot.slane %v1038_v63, 5  ;;  %v1065_v17 = vpack.c.b16 %v1060_v9, %v1059_v8  ;;  %v1209_v63 = vrot.slane %v3845_v25, 5  ;;  %v1214_v25 = vsel %vm3736_vm6, %v3028_v0, %v1213_v1  ;;  %v3093_v1 = vld [vmem:[%s3570_s7 + $0x20] sm:$0xf] }
  0x92   : > { %1720 = vmatpush.bf16.msra.mxu2 %v3176_v2  ;;  %v1247_v9 = vunpack.c.l.b16 %v1214_v25  ;;  %v3293_v2 = vld [vmem:[%s3570_s7 + $0x24] sm:$0xf0] }
  0x93   : > { %v1041_v21 = vor.u32 %v1040_v12, %v1037_v11  ;;  %v1210_v6 = vsel %vm3736_vm6, %v3027_v58, %v1209_v63  ;;  %v3169_v11 = vld [vmem:[%s4913_s1 + $0x168] sm:$0xf0]  ;;  %v3229_v12 = vld [vmem:[%s4913_s1 + $0x1a0] sm:$0xf] }
  0x94   : > { %v1246_v8 = vunpack.c.l.b16 %v1210_v6 }
  0x95   : > { %v1042_v29 = vrot.slane %v1041_v21, 4 }
  0x96   : > { %v1254_v31 = vpack.c.b16 %v1247_v9, %v1246_v8  ;;  %v3302_v9 = vld [vmem:[%s4913_s1 + $0x154] sm:$0xf] }
  0x97   : > { %v1047_v42 = vsel %vm3599_vm2, %v1042_v29, %v1046_v30 }
  0x98   : > { %v1062_v53 = vunpack.c.l.b16 %v1047_v42  ;;  %v1217_v42 = vrot.slane %v3877_v13, 5  ;;  %v3167_v13 = vld [vmem:[%s4913_s1 + $0x160] sm:$0xf] }
  0x9a   : > { %v1066_v4 = vpack.c.b16 %v1062_v53, %v1061_v52 }
  0x9c   : > { %2958 = vmatmul.msk.bf16.gmra.mxu2 %vm383_vm3, %v2924_v33  ;;  %2962 = vmatmul.msk.bf16.gmra.mxu3 %vm383_vm3, %v2924_v33  ;;  %v3180_v33 = vor.u32 %v3306_v27, %v3177_v24  ;;  %v3089_v27 = vld [vmem:[%s3570_s7 + $0x10] sm:$0xf]  ;;  %v3292_v24 = vld [vmem:[%s3570_s7 + $0x14] sm:$0xf0] }
  0x9d   : > { %v3090_v29 = vor.u32 %v3292_v24, %v3089_v27  ;;  %v3094_v27 = vor.u32 %v3293_v2, %v3093_v1  ;;  %v3026_v1 = vld [vmem:[%s3570_s7 + $0x40] sm:$0xe]  ;;  %v1233_v2 = vrot.slane %v3953_v14, 5 }
  0x9e   : > { %1749 = vmatpush.bf16.msra.mxu3 %v3180_v33 }
  0x9f   : > { %3016 = vmatmul.msk.bf16.gmra.mxu1 %vm383_vm3, %v1064_v43  ;;  %3012 = vmatmul.msk.bf16.gmra.mxu0 %vm383_vm3, %v1064_v43  ;;  %v3312_v43 = vld [vmem:[%s4913_s1 + $0x1a4] sm:$0xf] }
  0xa0   : > { %v3234_v48 = vor.u32 %v3312_v43, %v3231_v44  ;;  %v3030_v43 = vrot.slane %v3022_v36, 9  ;;  %v1221_v44 = vrot.slane %v3880_v60, 5  ;;  %v3305_v60 = vld [vmem:[%s4913_s1 + $0x164] sm:$0xf0]  ;;  %v1225_v36 = vrot.slane %v3921_v39, 5 }
  0xa1   : > { %v3215_v39 = vld [vmem:[%s4913_s1 + $0x188] sm:$0xf0] }
  0xa2   : > { %1940 = vmatpush.bf16.msra.mxu1 %v3234_v48  ;;  %v1222_v55 = vsel %vm3736_vm6, %v3030_v43, %v1221_v44  ;;  %v3308_v43 = vld [vmem:[%s4913_s1 + $0x184] sm:$0xf] }
  0xa3   : > { %v1249_v62 = vunpack.c.l.b16 %v1222_v55 }
  0xa6   : > { %1941 = vmatpush.bf16.msra.mxu1 %v3226_v45  ;;  %v3218_v45 = vor.u32 %v3308_v43, %v3215_v39 }
  0xaa   : > { %1942 = vmatpush.bf16.msra.mxu1 %v3218_v45 }
  0xac   : > { %v3958_v18 = vpop.f32.mrf.mxu1  ;;  %2959 = vmatmul.msk.bf16.gmra.mxu2 %vm383_vm3, %v2928_v10  ;;  %2963 = vmatmul.msk.bf16.gmra.mxu3 %vm383_vm3, %v2928_v10  ;;  %v3962_v19 = vpop.f32.mrf.mxu0  ;;  %v3304_v10 = vld [vmem:[%s4913_s1 + $0x164] sm:$0xf] }
  0xad   : > { %v3172_v16 = vor.u32 %v3304_v10, %v3169_v11  ;;  %v3161_v10 = vld [vmem:[%s4913_s1 + $0x158] sm:$0xf0]  ;;  %v3221_v11 = vld [vmem:[%s4913_s1 + $0x190] sm:$0xf] }
  0xaf   : > { %3017 = vmatmul.msk.bf16.gmra.mxu1 %vm383_vm3, %v1065_v17  ;;  %v3967_v23 = vpop.f32.mrf.mxu2  ;;  %v3969_v32 = vpop.f32.mrf.mxu3  ;;  %3013 = vmatmul.msk.bf16.gmra.mxu0 %vm383_vm3, %v1065_v17  ;;  %v3313_v17 = vld [vmem:[%s4913_s1 + $0x1a4] sm:$0xf0] }
  0xb0   : > { %v3230_v20 = vor.u32 %v3313_v17, %v3229_v12  ;;  %1750 = vmatpush.bf16.msra.mxu3 %v3172_v16  ;;  %v3164_v12 = vor.u32 %v3302_v9, %v3161_v10  ;;  %v3024_v17 = vld [vmem:[%s3570_s7 + $0x30] sm:$0xe]  ;;  %v3034_v10 = vrot.slane %v3026_v1, 9 }
  0xb2   : > { %1911 = vmatpush.bf16.msra.mxu0 %v3230_v20 }
  0xb4   : > { %v3984_v37 = vpop.f32.mrf.mxu1  ;;  %v3986_v38 = vpop.f32.mrf.mxu0  ;;  %1751 = vmatpush.bf16.msra.mxu3 %v3164_v12 }
  0xb7   : > { %v4000_v50 = vpop.f32.mrf.mxu2  ;;  %v4002_v51 = vpop.f32.mrf.mxu3 }
  0xbc   : > { %v4006_v49 = vpop.f32.mrf.mxu1  ;;  %2960 = vmatmul.msk.bf16.gmra.mxu2 %vm383_vm3, %v2932_v54  ;;  %2964 = vmatmul.msk.bf16.gmra.mxu3 %vm383_vm3, %v2932_v54  ;;  %v4010_v57 = vpop.f32.mrf.mxu0  ;;  %v1218_v54 = vsel %vm3736_vm6, %v3029_v34, %v1217_v42 }
  0xbd   : > { %v1248_v59 = vunpack.c.l.b16 %v1218_v54 }
  0xbf   : > { %3018 = vmatmul.msk.bf16.gmra.mxu1 %vm383_vm3, %v1066_v4  ;;  %v4021_v3 = vpop.f32.mrf.mxu2  ;;  %v4023_v5 = vpop.f32.mrf.mxu3  ;;  %3014 = vmatmul.msk.bf16.gmra.mxu0 %vm383_vm3, %v1066_v4  ;;  %v1255_v8 = vpack.c.b16 %v1249_v62, %v1248_v59 }
  0xc4   : > { %v4030_v7 = vpop.f32.mrf.mxu1  ;;  %v4032_v26 = vpop.f32.mrf.mxu0 }
  0xc7   : > { %v4046_v21 = vpop.f32.mrf.mxu2  ;;  %v4048_v22 = vpop.f32.mrf.mxu3 }
  0xcc   : > { %v732_v30 = vpop.f32.mrf.mxu1  ;;  %3065 = vmatmul.msk.bf16.vlgmr.msrb.gmra.mxu2 %vm383_vm3, %v1254_v31  ;;  %3069 = vmatmul.msk.bf16.vlgmr.msrb.gmra.mxu3 %vm383_vm3, %v1254_v31  ;;  %v703_v33 = vpop.f32.mrf.mxu0 }
  0xcf   : > { %3131 = vmatmul.msk.bf16.vlgmr.msrb.gmra.mxu1 %vm383_vm3, %v3090_v29  ;;  %v525_v47 = vpop.f32.mrf.mxu2  ;;  %v554_v48 = vpop.f32.mrf.mxu3  ;;  %3127 = vmatmul.msk.bf16.vlgmr.msrb.gmra.mxu0 %vm383_vm3, %v3090_v29  ;;  %v1229_v29 = vrot.slane %v3924_v40, 5 }
  0xd0   : > { %v526_v52 = vadd.f32 %v525_v47, %v3962_v19  ;;  %v555_v53 = vadd.f32 %v554_v48, %v3958_v18  ;;  %v3168_v19 = vor.u32 %v3305_v60, %v3167_v13  ;;  %v3159_v13 = vld [vmem:[%s4913_s1 + $0x150] sm:$0xf]  ;;  %v3303_v60 = vld [vmem:[%s4913_s1 + $0x154] sm:$0xf0] }
  0xd1   : > { %v3160_v54 = vor.u32 %v3303_v60, %v3159_v13 }
  0xd2   : > { %v4078_v46 = vadd.f32 %v703_v33, %v526_v52  ;;  %v4080_v18 = vadd.f32 %v732_v30, %v555_v53  ;;  %1721 = vmatpush.bf16.msra.mxu2 %v3168_v19  ;;  %v3032_v33 = vrot.slane %v3024_v17, 9 }
  0xd4   : > { %v734_v4 = vpop.f32.mrf.mxu1  ;;  %v705_v58 = vpop.f32.mrf.mxu0  ;;  %v1230_v44 = vsel %vm3736_vm6, %v3032_v33, %v1229_v29 }
  0xd5   : > { %v1251_v53 = vunpack.c.l.b16 %v1230_v44 }
  0xd6   : > { %1722 = vmatpush.bf16.msra.mxu2 %v3160_v54 }
  0xd7   : > { %v527_v63 = vpop.f32.mrf.mxu2  ;;  %v556_v0 = vpop.f32.mrf.mxu3 }
  0xd8   : > { %v528_v6 = vadd.f32 %v527_v63, %v3986_v38  ;;  %v557_v25 = vadd.f32 %v556_v0, %v3984_v37  ;;  %v3311_v38 = vld [vmem:[%s4913_s1 + $0x194] sm:$0xf0]  ;;  %v3023_v37 = vld [vmem:[%s3570_s7 + $0x28] sm:$0xe] }
  0xd9   : > { %v3222_v20 = vor.u32 %v3311_v38, %v3221_v11  ;;  %v3031_v30 = vrot.slane %v3023_v37, 9  ;;  %v3294_v63 = vld [vmem:[%s3570_s7 + $0x34] sm:$0xf0]  ;;  %v3135_v11 = vld [vmem:[%s3570_s7 + $0x10] sm:$0xf] }
  0xda   : > { %v4098_v16 = vadd.f32 %v705_v58, %v528_v6  ;;  %v4102_v31 = vadd.f32 %v734_v4, %v557_v25  ;;  %v3097_v4 = vld [vmem:[%s3570_s7 + $0x30] sm:$0xf]  ;;  %v3025_v0 = vld [vmem:[%s3570_s7 + $0x38] sm:$0xe]  ;;  %v1237_v6 = vrot.slane %v3956_v15, 5  ;;  %v1543_v37 = vshrl.u32 %v3135_v11, 16 }
  0xdb   : > { %1912 = vmatpush.bf16.msra.mxu0 %v3222_v20  ;;  %v1226_v40 = vsel %vm3736_vm6, %v3031_v30, %v1225_v36  ;;  %v3033_v9 = vrot.slane %v3025_v0, 9  ;;  %v3137_v38 = vld [vmem:[%s3570_s7 + $0x18] sm:$0xf]  ;;  %v3309_v36 = vld [vmem:[%s4913_s1 + $0x184] sm:$0xf0] }
  0xdc   : > { %v737_v24 = vpop.f32.mrf.mxu1  ;;  %3066 = vmatmul.msk.bf16.gmra.mxu2 %vm383_vm3, %v1255_v8  ;;  %3070 = vmatmul.msk.bf16.gmra.mxu3 %vm383_vm3, %v1255_v8  ;;  %v708_v28 = vpop.f32.mrf.mxu0  ;;  %v1250_v52 = vunpack.c.l.b16 %v1226_v40  ;;  %v3098_v8 = vor.u32 %v3294_v63, %v3097_v4  ;;  %v1238_v20 = vsel %vm3736_vm6, %v3034_v10, %v1237_v6  ;;  %v1560_v33 = vshll.u32 %v3137_v38, 16  ;;  %v3101_v4 = vld [vmem:[%s3570_s7 + $0x40] sm:$0xf]  ;;  %v3189_v10 = vld [vmem:[%s3570_s7 + $0x10] sm:$0xe] }
  0xdd   : > { %v1234_v17 = vsel %vm3736_vm6, %v3033_v9, %v1233_v2  ;;  %v1545_v43 = vrot.slane %v1543_v37, 4 }
  0xde   : > { %v1256_v62 = vpack.c.b16 %v1251_v53, %v1250_v52  ;;  %v3138_v52 = vld [vmem:[%s3570_s7 + $0x1c] sm:$0x1] }
  0xdf   : > { %3132 = vmatmul.msk.bf16.gmra.mxu1 %vm383_vm3, %v3094_v27  ;;  %v530_v34 = vpop.f32.mrf.mxu2  ;;  %v559_v35 = vpop.f32.mrf.mxu3  ;;  %3128 = vmatmul.msk.bf16.gmra.mxu0 %vm383_vm3, %v3094_v27  ;;  %v1546_v27 = vshll.u32 %v3135_v11, 16  ;;  %v3190_v11 = vld [vmem:[%s3570_s7 + $0x18] sm:$0xe] }
  0xe0   : > { %v531_v41 = vadd.f32 %v530_v34, %v4010_v57  ;;  %v560_v42 = vadd.f32 %v559_v35, %v4006_v49 }
  0xe1   : > { %v1548_v39 = vrot.slane %v1546_v27, 5 }
  0xe2   : > { %v4122_v47 = vadd.f32 %v708_v28, %v531_v41  ;;  %v4124_v49 = vadd.f32 %v737_v24, %v560_v42  ;;  %v1557_v24 = vshrl.u32 %v3137_v38, 16  ;;  %v3213_v28 = vld [vmem:[%s4913_s1 + $0x180] sm:$0xf]  ;;  %v1252_v41 = vunpack.c.l.b16 %v1234_v17 }
  0xe3   : > { %v3214_v34 = vor.u32 %v3309_v36, %v3213_v28  ;;  %v1253_v42 = vunpack.c.l.b16 %v1238_v20  ;;  %v1549_v60 = vor.u32 %v1548_v39, %v1545_v43  ;;  %v3198_v20 = vrot.slane %v3190_v11, 9  ;;  %v3145_v11 = vld [vmem:[%s3570_s7 + $0x38] sm:$0xf] }
  0xe4   : > { %v739_v57 = vpop.f32.mrf.mxu1  ;;  %v710_v48 = vpop.f32.mrf.mxu0  ;;  %v1819_v36 = vrot.slane %v3138_v52, 5 }
  0xe5   : > { %1913 = vmatpush.bf16.msra.mxu0 %v3214_v34  ;;  %v1257_v13 = vpack.c.b16 %v1253_v42, %v1252_v41  ;;  %v1550_v2 = vrot.slane %v1549_v60, 4 }
  0xe7   : > { %v532_v55 = vpop.f32.mrf.mxu2  ;;  %v561_v19 = vpop.f32.mrf.mxu3 }
  0xe8   : > { %v533_v58 = vadd.f32 %v532_v55, %v4032_v26  ;;  %v562_v59 = vadd.f32 %v561_v19, %v4030_v7 }
  0xea   : > { %v4140_v25 = vadd.f32 %v710_v48, %v533_v58  ;;  %v4143_v12 = vadd.f32 %v739_v57, %v562_v59  ;;  %v3136_v57 = vld [vmem:[%s3570_s7 + $0x14] sm:$0x1]  ;;  %v1562_v48 = vrot.slane %v1560_v33, 5  ;;  %v3295_v58 = vld [vmem:[%s3570_s7 + $0x44] sm:$0xf0] }
  0xeb   : > { %v1552_v54 = vshll.u32 %v3136_v57, 16  ;;  %v3102_v1 = vor.u32 %v3295_v58, %v3101_v4  ;;  %v1815_v17 = vrot.slane %v3136_v57, 5 }
  0xec   : > { %v742_v26 = vpop.f32.mrf.mxu1  ;;  %3067 = vmatmul.msk.bf16.gmra.mxu2 %vm383_vm3, %v1256_v62  ;;  %3071 = vmatmul.msk.bf16.gmra.mxu3 %vm383_vm3, %v1256_v62  ;;  %v713_v7 = vpop.f32.mrf.mxu0  ;;  %v1566_v62 = vshll.u32 %v3138_v52, 16 }
  0xed   : > { %v1554_v6 = vrot.slane %v1552_v54, 5 }
  0xee   : > { %v1568_v9 = vrot.slane %v1566_v62, 5 }
  0xef   : > { %3133 = vmatmul.msk.bf16.gmra.mxu1 %vm383_vm3, %v3098_v8  ;;  %v535_v14 = vpop.f32.mrf.mxu2  ;;  %v564_v15 = vpop.f32.mrf.mxu3  ;;  %3129 = vmatmul.msk.bf16.gmra.mxu0 %vm383_vm3, %v3098_v8 }
  0xf0   : > { %v536_v29 = vadd.f32 %v535_v14, %v3967_v23  ;;  %v565_v30 = vadd.f32 %v564_v15, %v3969_v32  ;;  %v1559_v23 = vrot.slane %v1557_v24, 4  ;;  %v1555_v14 = vsel %vm3599_vm2, %v1550_v2, %v1554_v6 }
  0xf1   : > { %v3197_v15 = vrot.slane %v3189_v10, 9  ;;  %v1661_v42 = vunpack.c.l.b16 %v1555_v14 }
  0xf2   : > { %v4162_v35 = vadd.f32 %v713_v7, %v536_v29  ;;  %v4164_v40 = vadd.f32 %v742_v26, %v565_v30  ;;  %v1563_v59 = vor.u32 %v1562_v48, %v1559_v23  ;;  %v3139_v26 = vld [vmem:[%s3570_s7 + $0x20] sm:$0xf]  ;;  %v3141_v7 = vld [vmem:[%s3570_s7 + $0x28] sm:$0xf] }
  0xf3   : > { %v1571_v29 = vshrl.u32 %v3139_v26, 16  ;;  %v1574_v30 = vshll.u32 %v3139_v26, 16  ;;  %v1585_v33 = vshrl.u32 %v3141_v7, 16  ;;  %v1588_v34 = vshll.u32 %v3141_v7, 16 }
  0xf4   : > { %v744_v44 = vpop.f32.mrf.mxu1  ;;  %v715_v45 = vpop.f32.mrf.mxu0 }
  0xf5   : > { %v1573_v57 = vrot.slane %v1571_v29, 4  ;;  %v1576_v23 = vrot.slane %v1574_v30, 5  ;;  %v1587_v48 = vrot.slane %v1585_v33, 4  ;;  %v1590_v52 = vrot.slane %v1588_v34, 5 }
  0xf6   : > { %v1613_v29 = vshrl.u32 %v3145_v11, 16  ;;  %v1616_v30 = vshll.u32 %v3145_v11, 16 }
  0xf7   : > { %v537_v32 = vpop.f32.mrf.mxu2  ;;  %v566_v53 = vpop.f32.mrf.mxu3 }
  0xf8   : > { %v538_v55 = vadd.f32 %v537_v32, %v4000_v50  ;;  %v567_v19 = vadd.f32 %v566_v53, %v4002_v51  ;;  %v1564_v51 = vrot.slane %v1563_v59, 4  ;;  %v3140_v32 = vld [vmem:[%s3570_s7 + $0x24] sm:$0x1]  ;;  %v3142_v53 = vld [vmem:[%s3570_s7 + $0x2c] sm:$0x1]  ;;  %v1577_v59 = vor.u32 %v1576_v23, %v1573_v57 }
  0xf9   : > { %v1580_v62 = vshll.u32 %v3140_v32, 16  ;;  %v1594_v2 = vshll.u32 %v3142_v53, 16  ;;  %v1618_v23 = vrot.slane %v1616_v30, 5 }
  0xfa   : > { %v4172_v63 = vadd.f32 %v715_v45, %v538_v55  ;;  %v4174_v0 = vadd.f32 %v744_v44, %v567_v19  ;;  %v1569_v28 = vsel %vm3599_vm2, %v1564_v51, %v1568_v9  ;;  %v3191_v51 = vld [vmem:[%s3570_s7 + $0x20] sm:$0xe]  ;;  %v3192_v9 = vld [vmem:[%s3570_s7 + $0x28] sm:$0xe]  ;;  %v1578_v26 = vrot.slane %v1577_v59, 4 }
  0xfb   : > { %v1662_v44 = vunpack.c.l.b16 %v1569_v28  ;;  %v1582_v7 = vrot.slane %v1580_v62, 5  ;;  %v3199_v14 = vrot.slane %v3191_v51, 9 }
  0xfc   : > { %v747_v8 = vpop.f32.mrf.mxu1  ;;  %3068 = vmatmul.msk.bf16.gmra.mxu2 %vm383_vm3, %v1257_v13  ;;  %3072 = vmatmul.msk.bf16.gmra.mxu3 %vm383_vm3, %v1257_v13  ;;  %v718_v50 = vpop.f32.mrf.mxu0 }
  0xfd   : > { %v1669_v58 = vpack.c.b16 %v1662_v44, %v1661_v42  ;;  %v1583_v42 = vsel %vm3599_vm2, %v1578_v26, %v1582_v7 }
  0xff   : > { %3134 = vmatmul.msk.bf16.gmra.mxu1 %vm383_vm3, %v3102_v1  ;;  %v540_v38 = vpop.f32.mrf.mxu2  ;;  %v569_v37 = vpop.f32.mrf.mxu3  ;;  %3130 = vmatmul.msk.bf16.gmra.mxu0 %vm383_vm3, %v3102_v1  ;;  %v1591_v1 = vor.u32 %v1590_v52, %v1587_v48  ;;  %v1663_v52 = vunpack.c.l.b16 %v1583_v42 }
 0x100   : > { %v541_v27 = vadd.f32 %v540_v38, %v4021_v3  ;;  %v570_v24 = vadd.f32 %v569_v37, %v4023_v5  ;;  %v1816_v3 = vsel %vm3736_vm6, %v3197_v15, %v1815_v17  ;;  %v1820_v5 = vsel %vm3736_vm6, %v3198_v20, %v1819_v36 }
 0x101   : > { %v1852_v54 = vunpack.c.l.b16 %v1816_v3  ;;  %v1853_v55 = vunpack.c.l.b16 %v1820_v5  ;;  %v1592_v38 = vrot.slane %v1591_v1, 4  ;;  %v1596_v37 = vrot.slane %v1594_v2, 5 }
 0x102   : > { %v4190_v41 = vadd.f32 %v718_v50, %v541_v27  ;;  %v4196_v45 = vadd.f32 %v747_v8, %v570_v24  ;;  %v1823_v15 = vrot.slane %v3140_v32, 5  ;;  %v3200_v17 = vrot.slane %v3192_v9, 9 }
 0x103   : > { %v1860_v50 = vpack.c.b16 %v1853_v55, %v1852_v54  ;;  %v1827_v20 = vrot.slane %v3142_v53, 5  ;;  %v3144_v53 = vld [vmem:[%s3570_s7 + $0x34] sm:$0x1] }
 0x104   : > { %v749_v43 = vpop.f32.mrf.mxu1  ;;  %v720_v39 = vpop.f32.mrf.mxu0  ;;  %v1824_v44 = vsel %vm3736_vm6, %v3199_v14, %v1823_v15  ;;  %v1608_v59 = vshll.u32 %v3144_v53, 16  ;;  %v3194_v14 = vld [vmem:[%s3570_s7 + $0x38] sm:$0xe]  ;;  %v3149_v15 = vld [vmem:[%s3570_s7 + $0x48] sm:$0xf] }
 0x105   : > { %v1828_v3 = vsel %vm3736_vm6, %v3200_v17, %v1827_v20  ;;  %v1854_v54 = vunpack.c.l.b16 %v1824_v44  ;;  %v1641_v44 = vshrl.u32 %v3149_v15, 16 }
 0x106   : > { %v1855_v55 = vunpack.c.l.b16 %v1828_v3  ;;  %v1610_v11 = vrot.slane %v1608_v59, 5  ;;  %v1644_v3 = vshll.u32 %v3149_v15, 16  ;;  %v3196_v15 = vld [vmem:[%s3570_s7 + $0x48] sm:$0xe] }
 0x107   : > { %v542_v13 = vpop.f32.mrf.mxu2  ;;  %v571_v60 = vpop.f32.mrf.mxu3 }
 0x108   : > { %v543_v19 = vadd.f32 %v542_v13, %v4046_v21  ;;  %v572_v4 = vadd.f32 %v571_v60, %v4048_v22  ;;  %v3143_v22 = vld [vmem:[%s3570_s7 + $0x30] sm:$0xf]  ;;  %v3146_v13 = vld [vmem:[%s3570_s7 + $0x3c] sm:$0x1] }
 0x109   : > { %v1599_v28 = vshrl.u32 %v3143_v22, 16  ;;  %v1602_v36 = vshll.u32 %v3143_v22, 16  ;;  %v1622_v1 = vshll.u32 %v3146_v13, 16 }
 0x10a   : > { %v4202_v6 = vadd.f32 %v720_v39, %v543_v19  ;;  %v4204_v8 = vadd.f32 %v749_v43, %v572_v4  ;;  %v1597_v43 = vsel %vm3599_vm2, %v1592_v38, %v1596_v37  ;;  %v3193_v37 = vld [vmem:[%s3570_s7 + $0x30] sm:$0xe] }
 0x10b   : > { %v1601_v5 = vrot.slane %v1599_v28, 4  ;;  %v1604_v57 = vrot.slane %v1602_v36, 5  ;;  %v1664_v32 = vunpack.c.l.b16 %v1597_v43  ;;  %v1624_v7 = vrot.slane %v1622_v1, 5 }
 0x10c   : > { %v1147_v10 = vpop.f32.mrf.mxu1  ;;  %3181 = vmatmul.msk.bf16.vlgmr.msra.gmra.mxu2 %vm383_vm3, %v1669_v58  ;;  %3185 = vmatmul.msk.bf16.vlgmr.msra.gmra.mxu3 %vm383_vm3, %v1669_v58  ;;  %v1118_v21 = vpop.f32.mrf.mxu0  ;;  %v3201_v28 = vrot.slane %v3193_v37, 9  ;;  %v1831_v36 = vrot.slane %v3144_v53, 5  ;;  %v1643_v53 = vrot.slane %v1641_v44, 4 }
 0x10d   : > { %v1605_v58 = vor.u32 %v1604_v57, %v1601_v5  ;;  %v1670_v51 = vpack.c.b16 %v1664_v32, %v1663_v52 }
 0x10f   : > { %3239 = vmatmul.msk.bf16.vlgmr.msra.gmra.mxu1 %vm383_vm3, %v1860_v50  ;;  %v855_v27 = vpop.f32.mrf.mxu2  ;;  %v884_v24 = vpop.f32.mrf.mxu3  ;;  %3235 = vmatmul.msk.bf16.vlgmr.msra.gmra.mxu0 %vm383_vm3, %v1860_v50  ;;  %v1606_v22 = vrot.slane %v1605_v58, 4 }
 0x110   : > { %v904_v33 = vadd.f32 %v855_v27, %v4078_v46  ;;  %v905_v34 = vadd.f32 %v884_v24, %v4080_v18  ;;  %v1615_v46 = vrot.slane %v1613_v29, 4 }
 0x111   : > { %v1611_v27 = vsel %vm3599_vm2, %v1606_v22, %v1610_v11 }
 0x112   : > { %v4220_v39 = vadd.f32 %v1118_v21, %v904_v33  ;;  %v4228_v60 = vadd.f32 %v1147_v10, %v905_v34  ;;  %v1619_v62 = vor.u32 %v1618_v23, %v1615_v46  ;;  %v1861_v10 = vpack.c.b16 %v1855_v55, %v1854_v54  ;;  %v3148_v54 = vld [vmem:[%s3570_s7 + $0x44] sm:$0x1]  ;;  %v3150_v55 = vld [vmem:[%s3570_s7 + $0x4c] sm:$0x1] }
 0x113   : > { %v3202_v33 = vrot.slane %v3194_v14, 9  ;;  %v1835_v34 = vrot.slane %v3146_v13, 5  ;;  %v1646_v13 = vrot.slane %v1644_v3, 5  ;;  %v1650_v22 = vshll.u32 %v3150_v55, 16 }
 0x114   : > { %v1149_v48 = vpop.f32.mrf.mxu1  ;;  %v1120_v18 = vpop.f32.mrf.mxu0  ;;  %v1620_v26 = vrot.slane %v1619_v62, 4 }
 0x116   : > { %v1625_v24 = vsel %vm3599_vm2, %v1620_v26, %v1624_v7 }
 0x117   : > { %v857_v19 = vpop.f32.mrf.mxu2  ;;  %v886_v4 = vpop.f32.mrf.mxu3 }
 0x118   : > { %v906_v2 = vadd.f32 %v857_v19, %v4098_v16  ;;  %v907_v50 = vadd.f32 %v886_v4, %v4102_v31  ;;  %v3147_v31 = vld [vmem:[%s3570_s7 + $0x40] sm:$0xf] }
 0x119   : > { %v1627_v42 = vshrl.u32 %v3147_v31, 16  ;;  %v1630_v43 = vshll.u32 %v3147_v31, 16  ;;  %v1652_v31 = vrot.slane %v1650_v22, 5 }
 0x11a   : > { %v4232_v9 = vadd.f32 %v1120_v18, %v906_v2  ;;  %v4234_v21 = vadd.f32 %v1149_v48, %v907_v50  ;;  %v1665_v48 = vunpack.c.l.b16 %v1611_v27  ;;  %v1666_v18 = vunpack.c.l.b16 %v1625_v24 }
 0x11b   : > { %v1629_v52 = vrot.slane %v1627_v42, 4  ;;  %v1632_v32 = vrot.slane %v1630_v43, 5  ;;  %v1839_v24 = vrot.slane %v3148_v54, 5 }
 0x11c   : > { %v1152_v38 = vpop.f32.mrf.mxu1  ;;  %3182 = vmatmul.msk.bf16.gmra.mxu2 %vm383_vm3, %v1670_v51  ;;  %3186 = vmatmul.msk.bf16.gmra.mxu3 %vm383_vm3, %v1670_v51  ;;  %v1123_v16 = vpop.f32.mrf.mxu0  ;;  %v1671_v2 = vpack.c.b16 %v1666_v18, %v1665_v48  ;;  %v1636_v51 = vshll.u32 %v3148_v54, 16 }
 0x11d   : > { %v1633_v50 = vor.u32 %v1632_v32, %v1629_v52 }
 0x11f   : > { %v860_v17 = vpop.f32.mrf.mxu2  ;;  %v889_v20 = vpop.f32.mrf.mxu3  ;;  %3236 = vmatmul.msk.bf16.gmra.mxu0 %vm383_vm3, %v1861_v10  ;;  %3240 = vmatmul.msk.bf16.gmra.mxu1 %vm383_vm3, %v1861_v10  ;;  %v1647_v10 = vor.u32 %v1646_v13, %v1643_v53  ;;  %v1634_v37 = vrot.slane %v1633_v50, 4 }
 0x120   : > { %v908_v29 = vadd.f32 %v860_v17, %v4122_v47  ;;  %v909_v30 = vadd.f32 %v889_v20, %v4124_v49  ;;  %v1832_v47 = vsel %vm3736_vm6, %v3201_v28, %v1831_v36  ;;  %v1836_v49 = vsel %vm3736_vm6, %v3202_v33, %v1835_v34 }
 0x121   : > { %v1856_v58 = vunpack.c.l.b16 %v1832_v47  ;;  %v1857_v59 = vunpack.c.l.b16 %v1836_v49  ;;  %v1648_v14 = vrot.slane %v1647_v10, 4 }
 0x122   : > { %v4250_v5 = vadd.f32 %v1123_v16, %v908_v29  ;;  %v4252_v57 = vadd.f32 %v1152_v38, %v909_v30  ;;  %v3204_v29 = vrot.slane %v3196_v15, 9  ;;  %v1843_v30 = vrot.slane %v3150_v55, 5 }
 0x123   : > { %v1862_v7 = vpack.c.b16 %v1857_v59, %v1856_v58  ;;  %v1653_v34 = vsel %vm3599_vm2, %v1648_v14, %v1652_v31 }
 0x124   : > { %v1154_v46 = vpop.f32.mrf.mxu1  ;;  %v1125_v23 = vpop.f32.mrf.mxu0 }
 0x127   : > { %v862_v19 = vpop.f32.mrf.mxu2  ;;  %v891_v4 = vpop.f32.mrf.mxu3 }
 0x128   : > { %v910_v62 = vadd.f32 %v862_v19, %v4140_v25  ;;  %v911_v1 = vadd.f32 %v891_v4, %v4143_v12  ;;  %v3195_v25 = vld [vmem:[%s3570_s7 + $0x40] sm:$0xe]  ;;  %v1638_v12 = vrot.slane %v1636_v51, 5  ;;  %s3435_s7 = smov 64  }
 0x129   : > { %v3203_v27 = vrot.slane %v3195_v25, 9 }
 0x12a   : > { %v4262_v11 = vadd.f32 %v1125_v23, %v910_v62  ;;  %v4264_v26 = vadd.f32 %v1154_v46, %v911_v1  ;;  %v1639_v33 = vsel %vm3599_vm2, %v1634_v37, %v1638_v12  ;;  %v1668_v23 = vunpack.c.l.b16 %v1653_v34 }
 0x12b   : > { %v1667_v46 = vunpack.c.l.b16 %v1639_v33 }
 0x12c   : > { %v1157_v38 = vpop.f32.mrf.mxu1  ;;  %3183 = vmatmul.msk.bf16.gmra.mxu2 %vm383_vm3, %v1671_v2  ;;  %3187 = vmatmul.msk.bf16.gmra.mxu3 %vm383_vm3, %v1671_v2  ;;  %v1128_v16 = vpop.f32.mrf.mxu0 }
 0x12d   : > { %v1672_v32 = vpack.c.b16 %v1668_v23, %v1667_v46 }
 0x12f   : > { %v865_v17 = vpop.f32.mrf.mxu2  ;;  %v894_v20 = vpop.f32.mrf.mxu3  ;;  %3237 = vmatmul.msk.bf16.gmra.mxu0 %vm383_vm3, %v1862_v7  ;;  %3241 = vmatmul.msk.bf16.gmra.mxu1 %vm383_vm3, %v1862_v7 }
 0x130   : > { %v912_v28 = vadd.f32 %v865_v17, %v4162_v35  ;;  %v913_v36 = vadd.f32 %v894_v20, %v4164_v40  ;;  %v1840_v35 = vsel %vm3736_vm6, %v3203_v27, %v1839_v24  ;;  %v1844_v40 = vsel %vm3736_vm6, %v3204_v29, %v1843_v30 }
 0x131   : > { %v1858_v47 = vunpack.c.l.b16 %v1840_v35  ;;  %v1859_v49 = vunpack.c.l.b16 %v1844_v40  ;;  %v3434_v29 = vmov 0.0  }
 0x132   : > { %v4278_v42 = vadd.f32 %v1128_v16, %v912_v28  ;;  %v4280_v43 = vadd.f32 %v1157_v38, %v913_v36  ;;  %2045 = vst [vmem:[#allocation2 + $0x68] sm:$0xff] %v3434_v29 }
 0x133   : > { %v1863_v54 = vpack.c.b16 %v1859_v49, %v1858_v47  ;;  %2047 = vst [vmem:[#allocation2 + $0x18] sm:$0x1] %v3434_v29 }
 0x134   : > { %v1159_v44 = vpop.f32.mrf.mxu1  ;;  %v1130_v3 = vpop.f32.mrf.mxu0  ;;  %2041 = vst [vmem:[#allocation2 + $0xd0] sm:$0xff] %v3434_v29 }
 0x135   : > { %2043 = vst [vmem:[#allocation2 + $0x48] sm:$0x1] %v3434_v29 }
 0x136   : > { %2044 = vst [vmem:[#allocation2 + $0x108] sm:$0xff] %v3434_v29 }
 0x137   : > { %v867_v48 = vpop.f32.mrf.mxu2  ;;  %v896_v18 = vpop.f32.mrf.mxu3  ;;  %2046 = vst [vmem:[#allocation2 + $0x30] sm:$0x1] %v3434_v29 }
 0x138   : > { %v914_v56 = vadd.f32 %v867_v48, %v4172_v63  ;;  %v915_v52 = vadd.f32 %v896_v18, %v4174_v0  ;;  %2048 = vst [vmem:[#allocation2 + $0x80] sm:$0xff] %v3434_v29 }
 0x139   : > { %2049 = vst [vmem:[#allocation2 + $0x110] sm:$0xff] %v3434_v29 }
 0x13a   : > { %v4288_v53 = vadd.f32 %v1130_v3, %v914_v56  ;;  %v4290_v13 = vadd.f32 %v1159_v44, %v915_v52  ;;  %2050 = vst [vmem:[#allocation2 + $0x118] sm:$0x1] %v3434_v29  ;;  %v2621_v56 = vrot.slane %v3434_v29, 7 }
 0x13b   : > { %v4365_v23 = vld [vmem:[#allocation2 + $0xd0] sm:$0xfe]  ;;  %2051 = vst [vmem:[#allocation2 + $0x98] sm:$0x1] %v3434_v29 }
 0x13c   : > { %v1162_v55 = vpop.f32.mrf.mxu1  ;;  %3184 = vmatmul.msk.bf16.gmra.mxu2 %vm383_vm3, %v1672_v32  ;;  %3188 = vmatmul.msk.bf16.gmra.mxu3 %vm383_vm3, %v1672_v32  ;;  %v1133_v61 = vpop.f32.mrf.mxu0  ;;  %2052 = vst [vmem:[#allocation2 + $0xf8] sm:$0xff] %v3434_v29  ;;  %v4369_v35 = vld [vmem:[#allocation2 + $0x48] sm:$0x1] }
 0x13d   : > { %2053 = vst [vmem:[#allocation2 + $0x38] sm:$0xff] %v3434_v29  ;;  %v3365_v40 = vpack.i.bf16 %v4369_v35, %v4365_v23 }
 0x13e   : > { %2054 = vst [vmem:[#allocation2 + $0x8] sm:$0x1] %v3434_v29 }
 0x13f   : > { %v870_v19 = vpop.f32.mrf.mxu2  ;;  %v899_v4 = vpop.f32.mrf.mxu3  ;;  %3238 = vmatmul.msk.bf16.gmra.mxu0 %vm383_vm3, %v1863_v54  ;;  %3242 = vmatmul.msk.bf16.gmra.mxu1 %vm383_vm3, %v1863_v54  ;;  %2055 = vst [vmem:[#allocation2 + $0x78] sm:$0x1] %v3434_v29 }
 0x140   : > { %v916_v63 = vadd.f32 %v870_v19, %v4190_v41  ;;  %v917_v0 = vadd.f32 %v899_v4, %v4196_v45  ;;  %3366 = vrot.lane.b32.xlu0 %v3365_v40, %s3435_s7  ;;  %2056 = vst [vmem:[#allocation2 + $0x20] sm:$0xff] %v3434_v29 }
 0x141   : > { %2057 = vst [vmem:[#allocation2 + $0xc8] sm:$0xff] %v3434_v29 }
 0x142   : > { %v4298_v58 = vadd.f32 %v1133_v61, %v916_v63  ;;  %v4300_v59 = vadd.f32 %v1162_v55, %v917_v0  ;;  %2058 = vst [vmem:[#allocation2 + $0x90] sm:$0x1] %v3434_v29  ;;  %v1980_v0 = vld [vmem:[%s4914_s2] sm:$0x3] }
 0x143   : > { %2059 = vst [vmem:[#allocation2 + $0xa0] sm:$0x1] %v3434_v29 }
 0x144   : > { %v1164_v62 = vpop.f32.mrf.mxu1  ;;  %v1135_v1 = vpop.f32.mrf.mxu0  ;;  %2060 = vst [vmem:[#allocation2 + $0x70] sm:$0xff] %v3434_v29 }
 0x145   : > { %2061 = vst [vmem:[#allocation2 + $0x58] sm:$0xff] %v3434_v29 }
 0x146   : > { %2062 = vst [vmem:[#allocation2 + $0xe0] sm:$0x1] %v3434_v29 }
 0x147   : > { %v872_v2 = vpop.f32.mrf.mxu2  ;;  %v901_v50 = vpop.f32.mrf.mxu3  ;;  %2063 = vst [vmem:[#allocation2 + $0x60] sm:$0x1] %v3434_v29 }
 0x148   : > { %v918_v51 = vadd.f32 %v872_v2, %v4202_v6  ;;  %v919_v10 = vadd.f32 %v901_v50, %v4204_v8  ;;  %2629 = vrot.lane.b32.xlu0 %v2621_v56, %s3435_s7  ;;  %2064 = vst [vmem:[#allocation2 + $0xa8] sm:$0xff] %v3434_v29  ;;  %v2002_v2 = vld [vmem:[%s4915_s3] sm:$0x3] }
 0x149   : > { %2065 = vst [vmem:[#allocation2 + $0x88] sm:$0xff] %v3434_v29  ;;  %v4435_v40 = vperm.slane %v2002_v2, 1 }
 0x14a   : > { %v4304_v22 = vadd.f32 %v1135_v1, %v918_v51  ;;  %v4306_v7 = vadd.f32 %v1164_v62, %v919_v10  ;;  %2066 = vst [vmem:[#allocation2 + $0xd8] sm:$0x1] %v3434_v29  ;;  %v4426_v10 = vperm.slane %v1980_v0, 1 }
 0x14b   : > { %2067 = vst [vmem:[#allocation2 + $0xc0] sm:$0x1] %v3434_v29 }
 0x14c   : > { %v4308_v38 = vpop.f32.mrf.mxu1  ;;  %v4310_v41 = vpop.f32.mrf.mxu0  ;;  %2068 = vst [vmem:[#allocation2 + $0x50] sm:$0xff] %v3434_v29 }
 0x14d   : > { %2069 = vst [vmem:[#allocation2 + $0xf0] sm:$0xff] %v3434_v29 }
 0x14e   : > { %2070 = vst [vmem:[#allocation2 + $0xb8] sm:$0x1] %v3434_v29 }
 0x14f   : > { %v4312_v45 = vpop.f32.mrf.mxu2  ;;  %v4314_v16 = vpop.f32.mrf.mxu3  ;;  %2071 = vst [vmem:[#allocation2 + $0x28] sm:$0x1] %v3434_v29 }
 0x150   : > { %v1358_v61 = vadd.f32 %v4312_v45, %v4220_v39  ;;  %v1359_v19 = vadd.f32 %v4314_v16, %v4228_v60  ;;  %2072 = vst [vmem:[#allocation2 + $0x100] sm:$0xff] %v3434_v29  ;;  %v4429_v45 = vperm.slane %v1980_v0, 0 }
 0x151   : > { %2073 = vst [vmem:[#allocation2] sm:$0xff] %v3434_v29 }
 0x152   : > { %v1510_v62 = vadd.f32 %v4310_v41, %v1358_v61  ;;  %v1511_v39 = vadd.f32 %v4308_v38, %v1359_v19  ;;  %2074 = vst [vmem:[#allocation2 + $0x40] sm:$0x1] %v3434_v29  ;;  %v4437_v61 = vperm.slane %v2002_v2, 0 }
 0x153   : > { %2075 = vst [vmem:[#allocation2 + $0xe8] sm:$0x1] %v3434_v29 }
 0x154   : > { %v4316_v25 = vpop.f32.mrf.mxu1  ;;  %v4318_v37 = vpop.f32.mrf.mxu0 }
 0x157   : > { %v4320_v12 = vpop.f32.mrf.mxu2  ;;  %v4322_v6 = vpop.f32.mrf.mxu3 }
 0x158   : > { %v1360_v38 = vadd.f32 %v4320_v12, %v4232_v9  ;;  %v1361_v41 = vadd.f32 %v4322_v6, %v4234_v21 }
 0x15a   : > { %v1512_v0 = vadd.f32 %v4318_v37, %v1360_v38  ;;  %v1513_v21 = vadd.f32 %v4316_v25, %v1361_v41 }
 0x15c   : > { %v4324_v8 = vpop.f32.mrf.mxu1  ;;  %v4326_v14 = vpop.f32.mrf.mxu0 }
 0x15f   : > { %v4328_v31 = vpop.f32.mrf.mxu2  ;;  %v4330_v15 = vpop.f32.mrf.mxu3 }
 0x164   : > { %v4332_v17 = vpop.f32.mrf.mxu1  ;;  %v4334_v20 = vpop.f32.mrf.mxu0 }
 0x167   : > { %v4336_v27 = vpop.f32.mrf.mxu2  ;;  %v4338_v24 = vpop.f32.mrf.mxu3 }
 0x16c   : > { %v4340_v28 = vpop.f32.mrf.mxu1  ;;  %v4342_v36 = vpop.f32.mrf.mxu0 }
 0x16f   : > { %v4346_v30 = vpop.f32.mrf.mxu2  ;;  %v4348_v33 = vpop.f32.mrf.mxu3 }
 0x174   : > { %v4353_v34 = vpop.f32.mrf.mxu1  ;;  %v4355_v44 = vpop.f32.mrf.mxu0 }
 0x177   : > { %v4360_v3 = vpop.f32.mrf.mxu2  ;;  %v4362_v46 = vpop.f32.mrf.mxu3 }
 0x17c   : > { %v4375_v48 = vpop.f32.mrf.mxu1  ;;  %v4377_v18 = vpop.f32.mrf.mxu0 }
 0x17f   : > { %v4383_v47 = vpop.f32.mrf.mxu2  ;;  %v4385_v49 = vpop.f32.mrf.mxu3 }
 0x184   : > { %v4393_v52 = vpop.f32.mrf.mxu1  ;;  %v4395_v32 = vpop.f32.mrf.mxu0 }
 0x187   : > { %v4401_v54 = vpop.f32.mrf.mxu2  ;;  %v4403_v55 = vpop.f32.mrf.mxu3 }
 0x18c   : > { %v1944_v4 = vpop.f32.mrf.mxu1  ;;  %v1915_v63 = vpop.f32.mrf.mxu0 }
 0x18f   : > { %v1724_v60 = vpop.f32.mrf.mxu2  ;;  %v1753_v1 = vpop.f32.mrf.mxu3 }
 0x190   : > { %v1773_v50 = vadd.f32 %v1724_v60, %v1510_v62  ;;  %v1774_v51 = vadd.f32 %v1753_v1, %v1511_v39 }
 0x192   : > { %v1965_v16 = vadd.f32 %v1944_v4, %v1774_v51  ;;  %v1964_v56 = vadd.f32 %v1915_v63, %v1773_v50  ;;  %v1362_v50 = vadd.f32 %v4328_v31, %v4250_v5  ;;  %v1363_v51 = vadd.f32 %v4330_v15, %v4252_v57 }
 0x194   : > { %v1987_v19 = vmul.f32 %v4426_v10, %v1965_v16  ;;  %v1986_v62 = vmul.f32 %v4429_v45, %v1964_v56  ;;  %v1946_v39 = vpop.f32.mrf.mxu1  ;;  %v1917_v29 = vpop.f32.mrf.mxu0  ;;  %v1515_v57 = vadd.f32 %v4324_v8, %v1363_v51 }
 0x196   : > { %v2009_v60 = vadd.f32 %v4435_v40, %v1987_v19  ;;  %v2008_v9 = vadd.f32 %v4437_v61, %v1986_v62 }
 0x197   : > { %v1726_v12 = vpop.f32.mrf.mxu2  ;;  %v1755_v6 = vpop.f32.mrf.mxu3 }
 0x198   : > { %v2025_v4 = vmax.f32 %v2009_v60, 0.0  ;;  %v2024_v63 = vmax.f32 %v2008_v9, 0.0  ;;  %v1775_v1 = vadd.f32 %v1726_v12, %v1512_v0  ;;  %v1776_v2 = vadd.f32 %v1755_v6, %v1513_v21 }
 0x199   : > { %v1514_v0 = vadd.f32 %v4326_v14, %v1362_v50  ;;  %v1364_v12 = vadd.f32 %v4336_v27, %v4262_v11  ;;  %v1365_v14 = vadd.f32 %v4338_v24, %v4264_v26 }
 0x19a   : > { %v2093_v16 = vrot.slane %v2025_v4, 7  ;;  %v2092_v37 = vrot.slane %v2024_v63, 7  ;;  %v1967_v38 = vadd.f32 %v1946_v39, %v1776_v2  ;;  %v1966_v56 = vadd.f32 %v1917_v29, %v1775_v1 }
 0x19b   : > { %v1516_v11 = vadd.f32 %v4334_v20, %v1364_v12 }
 0x19c   : > { %2126 = vst [vmem:[#allocation2 + $0x68] sm:$0xfe] %v2093_v16  ;;  %v1989_v19 = vmul.f32 %v4426_v10, %v1967_v38  ;;  %v1988_v25 = vmul.f32 %v4429_v45, %v1966_v56  ;;  %v1920_v41 = vpop.f32.mrf.mxu0  ;;  %v1949_v62 = vpop.f32.mrf.mxu1  ;;  %v1517_v38 = vadd.f32 %v4332_v17, %v1365_v14 }
 0x19d   : > { %2128 = vst [vmem:[#allocation2 + $0x18] sm:$0x1] %v2093_v16 }
 0x19e   : > { %2125 = vst [vmem:[#allocation2 + $0x108] sm:$0xfe] %v2092_v37  ;;  %v2011_v5 = vadd.f32 %v4435_v40, %v1989_v19  ;;  %v2010_v31 = vadd.f32 %v4437_v61, %v1988_v25 }
 0x19f   : > { %2127 = vst [vmem:[#allocation2 + $0x30] sm:$0x1] %v2092_v37  ;;  %v1729_v15 = vpop.f32.mrf.mxu2  ;;  %v1758_v39 = vpop.f32.mrf.mxu3 }
 0x1a0   : > { %v2027_v29 = vmax.f32 %v2011_v5, 0.0  ;;  %v2026_v60 = vmax.f32 %v2010_v31, 0.0  ;;  %v1777_v9 = vadd.f32 %v1729_v15, %v1514_v0  ;;  %v1778_v21 = vadd.f32 %v1758_v39, %v1515_v57 }
 0x1a1   : > { %v1366_v0 = vadd.f32 %v4346_v30, %v4278_v42  ;;  %v1367_v5 = vadd.f32 %v4348_v33, %v4280_v43 }
 0x1a2   : > { %v2095_v6 = vrot.slane %v2027_v29, 7  ;;  %v2094_v4 = vrot.slane %v2026_v60, 7  ;;  %v1968_v63 = vadd.f32 %v1920_v41, %v1777_v9  ;;  %v1969_v1 = vadd.f32 %v1949_v62, %v1778_v21 }
 0x1a3   : > { %v4485_v9 = vld [vmem:[#allocation2 + $0x68] sm:$0xfe]  ;;  %v1518_v42 = vadd.f32 %v4342_v36, %v1366_v0  ;;  %v1519_v14 = vadd.f32 %v4340_v28, %v1367_v5 }
 0x1a4   : > { %2130 = vst [vmem:[#allocation2 + $0x110] sm:$0xfe] %v2095_v6  ;;  %v1990_v8 = vmul.f32 %v4429_v45, %v1968_v63  ;;  %v1991_v2 = vmul.f32 %v4426_v10, %v1969_v1  ;;  %v4461_v50 = vld [vmem:[#allocation2 + $0x18] sm:$0x1]  ;;  %v1922_v16 = vpop.f32.mrf.mxu0  ;;  %v1951_v37 = vpop.f32.mrf.mxu1 }
 0x1a5   : > { %v4463_v51 = vld [vmem:[#allocation2 + $0x18] sm:$0x1]  ;;  %2132 = vst [vmem:[#allocation2 + $0x98] sm:$0x1] %v2095_v6  ;;  %2547 = vrot.lane.b32.xlu2 %v4461_v50, %s3435_s7  ;;  %v4470_v26 = vld [vmem:[#allocation2 + $0x108] sm:$0xfe] }
 0x1a6   : > { %2399 = vrot.lane.b32.xlu1 %v4463_v51, %s3435_s7  ;;  %2129 = vst [vmem:[#allocation2 + $0x80] sm:$0xfe] %v2094_v4  ;;  %v2012_v27 = vadd.f32 %v4437_v61, %v1990_v8  ;;  %v2013_v24 = vadd.f32 %v4435_v40, %v1991_v2  ;;  %2189 = vrot.lane.b32.xlu0 %v4470_v26, %s3435_s7  ;;  %v4492_v43 = vld [vmem:[#allocation2 + $0x30] sm:$0x1]  ;;  %v2253_v2 = vld [vmem:[#allocation2 + $0x108] sm:$0xff] }
 0x1a7   : > { %2131 = vst [vmem:[#allocation2 + $0x118] sm:$0x1] %v2094_v4  ;;  %v1731_v20 = vpop.f32.mrf.mxu2  ;;  %v1760_v56 = vpop.f32.mrf.mxu3  ;;  %v2269_v28 = vrot.slane %v2253_v2, 7 }
 0x1a8   : > { %v2028_v19 = vmax.f32 %v2012_v27, 0.0  ;;  %v2029_v25 = vmax.f32 %v2013_v24, 0.0  ;;  %v1779_v41 = vadd.f32 %v1731_v20, %v1516_v11  ;;  %v1780_v62 = vadd.f32 %v1760_v56, %v1517_v38 }
 0x1a9   : > { %v1369_v11 = vadd.f32 %v4362_v46, %v4290_v13 }
 0x1aa   : > { %v2096_v31 = vrot.slane %v2028_v19, 7  ;;  %v2097_v57 = vrot.slane %v2029_v25, 7  ;;  %v1970_v15 = vadd.f32 %v1922_v16, %v1779_v41  ;;  %v1971_v39 = vadd.f32 %v1951_v37, %v1780_v62 }
 0x1ab   : > { %v4481_v29 = vld [vmem:[#allocation2 + $0x110] sm:$0xfe]  ;;  %v1368_v37 = vadd.f32 %v4360_v3, %v4288_v53  ;;  %v4507_v53 = vld [vmem:[#allocation2 + $0x68] sm:$0xfe]  ;;  %v1521_v46 = vadd.f32 %v4353_v34, %v1369_v11 }
 0x1ac   : > { %2133 = vst [vmem:[#allocation2 + $0xf8] sm:$0xfe] %v2096_v31  ;;  %v1992_v17 = vmul.f32 %v4429_v45, %v1970_v15  ;;  %v1993_v60 = vmul.f32 %v4426_v10, %v1971_v39  ;;  %v1925_v21 = vpop.f32.mrf.mxu0  ;;  %v1954_v12 = vpop.f32.mrf.mxu1 }
 0x1ad   : > { %2135 = vst [vmem:[#allocation2 + $0x8] sm:$0x1] %v2096_v31  ;;  %2401 = vrot.lane.b32.xlu2 %v4481_v29, %s3435_s7  ;;  %v2254_v16 = vld [vmem:[#allocation2 + $0x80] sm:$0xff]  ;;  %v1520_v0 = vadd.f32 %v4355_v44, %v1368_v37 }
 0x1ae   : > { %2545 = vrot.lane.b32.xlu1 %v4485_v9, %s3435_s7  ;;  %2134 = vst [vmem:[#allocation2 + $0x38] sm:$0xfe] %v2097_v57  ;;  %v2014_v30 = vadd.f32 %v4437_v61, %v1992_v17  ;;  %v2015_v33 = vadd.f32 %v4435_v40, %v1993_v60  ;;  %2191 = vrot.lane.b32.xlu0 %v4492_v43, %s3435_s7  ;;  %v2270_v56 = vrot.slane %v2254_v16, 7  ;;  %v2461_v17 = vld [vmem:[#allocation2 + $0x68] sm:$0xff]  ;;  %v2462_v60 = vld [vmem:[#allocation2 + $0x110] sm:$0xff] }
 0x1af   : > { %2136 = vst [vmem:[#allocation2 + $0x78] sm:$0x1] %v2097_v57  ;;  %v1734_v36 = vpop.f32.mrf.mxu2  ;;  %v1763_v6 = vpop.f32.mrf.mxu3  ;;  %v2477_v34 = vrot.slane %v2461_v17, 7 }
 0x1b0   : > { %v2030_v4 = vmax.f32 %v2014_v30, 0.0  ;;  %v2031_v63 = vmax.f32 %v2015_v33, 0.0  ;;  %v1781_v1 = vadd.f32 %v1734_v36, %v1518_v42  ;;  %v1782_v8 = vadd.f32 %v1763_v6, %v1519_v14 }
 0x1b1   : > { %v2478_v36 = vrot.slane %v2462_v60, 7 }
 0x1b2   : > { %v2098_v27 = vrot.slane %v2030_v4, 7  ;;  %v2099_v24 = vrot.slane %v2031_v63, 7  ;;  %v1972_v38 = vadd.f32 %v1925_v21, %v1781_v1  ;;  %v1973_v20 = vadd.f32 %v1954_v12, %v1782_v8 }
 0x1b3   : > { %v1370_v21 = vadd.f32 %v4383_v47, %v4298_v58  ;;  %v1371_v12 = vadd.f32 %v4385_v49, %v4300_v59  ;;  %v4523_v58 = vld [vmem:[#allocation2 + $0x98] sm:$0x1] }
 0x1b4   : > { %2137 = vst [vmem:[#allocation2 + $0x20] sm:$0xfe] %v2098_v27  ;;  %v1994_v19 = vmul.f32 %v4429_v45, %v1972_v38  ;;  %v1995_v25 = vmul.f32 %v4426_v10, %v1973_v20  ;;  %v1927_v41 = vpop.f32.mrf.mxu0  ;;  %v1956_v62 = vpop.f32.mrf.mxu1  ;;  %v1373_v38 = vadd.f32 %v4403_v55, %v4306_v7 }
 0x1b5   : > { %2139 = vst [vmem:[#allocation2 + $0x90] sm:$0x1] %v2098_v27  ;;  %2279 = vrot.lane.b32.xlu2 %v2270_v56, %s3435_s7  ;;  %v1522_v8 = vadd.f32 %v4377_v18, %v1370_v21  ;;  %v1523_v49 = vadd.f32 %v4375_v48, %v1371_v12  ;;  %v4549_v21 = vld [vmem:[#allocation2 + $0x80] sm:$0xfe] }
 0x1b6   : > { %2277 = vrot.lane.b32.xlu1 %v2269_v28, %s3435_s7  ;;  %2138 = vst [vmem:[#allocation2 + $0xc8] sm:$0xfe] %v2099_v24  ;;  %v2016_v13 = vadd.f32 %v4437_v61, %v1994_v19  ;;  %v2017_v3 = vadd.f32 %v4435_v40, %v1995_v25  ;;  %2397 = vrot.lane.b32.xlu0 %v4507_v53, %s3435_s7  ;;  %v4553_v12 = vld [vmem:[#allocation2 + $0x78] sm:$0x1] }
 0x1b7   : > { %2140 = vst [vmem:[#allocation2 + $0xa0] sm:$0x1] %v2099_v24  ;;  %v1736_v5 = vpop.f32.mrf.mxu2  ;;  %v1765_v44 = vpop.f32.mrf.mxu3  ;;  %v1372_v24 = vadd.f32 %v4401_v54, %v4304_v22  ;;  %v1525_v54 = vadd.f32 %v4393_v52, %v1373_v38  ;;  %v4551_v52 = vld [vmem:[#allocation2 + $0xf8] sm:$0xfe] }
 0x1b8   : > { %v2032_v31 = vmax.f32 %v2016_v13, 0.0  ;;  %v2033_v57 = vmax.f32 %v2017_v3, 0.0  ;;  %v1783_v15 = vadd.f32 %v1736_v5, %v1520_v0  ;;  %v1784_v39 = vadd.f32 %v1765_v44, %v1521_v46 }
 0x1ba   : > { %v2100_v42 = vrot.slane %v2032_v31, 7  ;;  %v2101_v30 = vrot.slane %v2033_v57, 7  ;;  %v1974_v33 = vadd.f32 %v1927_v41, %v1783_v15  ;;  %v1975_v14 = vadd.f32 %v1956_v62, %v1784_v39  ;;  %v4539_v62 = vld [vmem:[#allocation2 + $0x110] sm:$0xfe] }
 0x1bb   : > { %v1524_v41 = vadd.f32 %v4395_v32, %v1372_v24 }
 0x1bc   : > { %2141 = vst [vmem:[#allocation2 + $0x70] sm:$0xfe] %v2100_v42  ;;  %v1996_v6 = vmul.f32 %v4429_v45, %v1974_v33  ;;  %v1997_v4 = vmul.f32 %v4426_v10, %v1975_v14  ;;  %v1930_v63 = vpop.f32.mrf.mxu0  ;;  %v1959_v1 = vpop.f32.mrf.mxu1  ;;  %v2255_v33 = vld [vmem:[#allocation2 + $0xf8] sm:$0xff] }
 0x1bd   : > { %2143 = vst [vmem:[#allocation2 + $0xe0] sm:$0x1] %v2100_v42  ;;  %2487 = vrot.lane.b32.xlu2 %v2478_v36, %s3435_s7 }
 0x1be   : > { %2485 = vrot.lane.b32.xlu1 %v2477_v34, %s3435_s7  ;;  %2142 = vst [vmem:[#allocation2 + $0x58] sm:$0xfe] %v2101_v30  ;;  %v2018_v59 = vadd.f32 %v4437_v61, %v1996_v6  ;;  %v2019_v47 = vadd.f32 %v4435_v40, %v1997_v4  ;;  %2403 = vrot.lane.b32.xlu0 %v4523_v58, %s3435_s7  ;;  %v2271_v6 = vrot.slane %v2255_v33, 7  ;;  %v4565_v4 = vld [vmem:[#allocation2 + $0x8] sm:$0x1] }
 0x1bf   : > { %2144 = vst [vmem:[#allocation2 + $0x60] sm:$0x1] %v2101_v30  ;;  %v1739_v2 = vpop.f32.mrf.mxu2  ;;  %v1768_v18 = vpop.f32.mrf.mxu3 }
 0x1c0   : > { %v2034_v16 = vmax.f32 %v2018_v59, 0.0  ;;  %v2035_v37 = vmax.f32 %v2019_v47, 0.0  ;;  %v1785_v11 = vadd.f32 %v1739_v2, %v1522_v8  ;;  %v1786_v27 = vadd.f32 %v1768_v18, %v1523_v49  ;;  %v4581_v8 = vld [vmem:[#allocation2 + $0x38] sm:$0xfe]  ;;  %v4590_v47 = vld [vmem:[#allocation2 + $0xa0] sm:$0x1] }
 0x1c1   : > { %v4583_v59 = vld [vmem:[#allocation2 + $0x38] sm:$0xfe]  ;;  %v4592_v49 = vld [vmem:[#allocation2 + $0x90] sm:$0x1]  ;;  %v4598_v2 = vld [vmem:[#allocation2 + $0x20] sm:$0xfe] }
 0x1c2   : > { %v2102_v20 = vrot.slane %v2034_v16, 7  ;;  %v2103_v28 = vrot.slane %v2035_v37, 7  ;;  %v1976_v56 = vadd.f32 %v1930_v63, %v1785_v11  ;;  %v1977_v19 = vadd.f32 %v1959_v1, %v1786_v27  ;;  %v4574_v1 = vld [vmem:[#allocation2 + $0x78] sm:$0x1]  ;;  %v4604_v16 = vld [vmem:[#allocation2 + $0xa0] sm:$0x1] }
 0x1c3   : > { %v4602_v18 = vld [vmem:[#allocation2 + $0x70] sm:$0xfe]  ;;  %v4610_v37 = vld [vmem:[#allocation2 + $0xc8] sm:$0xfe] }
 0x1c4   : > { %2145 = vst [vmem:[#allocation2 + $0xa8] sm:$0xfe] %v2102_v20  ;;  %v1998_v48 = vmul.f32 %v4429_v45, %v1976_v56  ;;  %v1999_v25 = vmul.f32 %v4426_v10, %v1977_v19  ;;  %v1932_v55 = vpop.f32.mrf.mxu0  ;;  %v1961_v0 = vpop.f32.mrf.mxu1  ;;  %v4616_v27 = vld [vmem:[#allocation2 + $0xc8] sm:$0xfe]  ;;  %v4622_v24 = vld [vmem:[#allocation2 + $0xe0] sm:$0x1] }
 0x1c5   : > { %2147 = vst [vmem:[#allocation2 + $0xd8] sm:$0x1] %v2102_v20  ;;  %2633 = vrot.lane.b32.xlu2 %v2478_v36, %s3435_s7  ;;  %v4563_v36 = vld [vmem:[#allocation2 + $0x118] sm:$0x1]  ;;  %v4614_v11 = vld [vmem:[#allocation2 + $0x58] sm:$0xfe] }
 0x1c6   : > { %2631 = vrot.lane.b32.xlu1 %v2477_v34, %s3435_s7  ;;  %2146 = vst [vmem:[#allocation2 + $0x88] sm:$0xfe] %v2103_v28  ;;  %v2020_v22 = vadd.f32 %v4437_v61, %v1998_v48  ;;  %v2021_v7 = vadd.f32 %v4435_v40, %v1999_v25  ;;  %2549 = vrot.lane.b32.xlu0 %v4539_v62, %s3435_s7  ;;  %v2257_v20 = vld [vmem:[#allocation2 + $0x70] sm:$0xff]  ;;  %v4628_v48 = vpop.permute.xlu0 %3366  ;;  %v4632_v25 = vld [vmem:[#allocation2 + $0x60] sm:$0x1] }
 0x1c7   : > { %2148 = vst [vmem:[#allocation2 + $0xc0] sm:$0x1] %v2103_v28  ;;  %v1741_v32 = vpop.f32.mrf.mxu2  ;;  %v1770_v13 = vpop.f32.mrf.mxu3  ;;  %v2256_v28 = vld [vmem:[#allocation2 + $0x20] sm:$0xff]  ;;  %v2273_v56 = vrot.slane %v2257_v20, 7 }
 0x1c8   : > { %v2036_v3 = vmax.f32 %v2020_v22, 0.0  ;;  %v2037_v46 = vmax.f32 %v2021_v7, 0.0  ;;  %v1787_v5 = vadd.f32 %v1741_v32, %v1524_v41  ;;  %v1788_v44 = vadd.f32 %v1770_v13, %v1525_v54  ;;  %v4638_v22 = vld [vmem:[#allocation2 + $0x58] sm:$0xff]  ;;  %v2464_v7 = vld [vmem:[#allocation2 + $0xc8] sm:$0xff] }
 0x1c9   : > { %v2272_v19 = vrot.slane %v2256_v28, 7  ;;  %v4917_v54 = vrot.slane %v4638_v22, 7 }
 0x1ca   : > { %v2104_v31 = vrot.slane %v2036_v3, 7  ;;  %v2105_v57 = vrot.slane %v2037_v46, 7  ;;  %v1978_v15 = vadd.f32 %v1932_v55, %v1787_v5  ;;  %v1979_v39 = vadd.f32 %v1961_v0, %v1788_v44  ;;  %v4645_v0 = vld [vmem:[#allocation2 + $0x58] sm:$0xfe] }
 0x1cb   : > { %v2480_v55 = vrot.slane %v2464_v7, 7  ;;  %v4681_v33 = vld [vmem:[#allocation2 + $0xa8] sm:$0xfe] }
 0x1cc   : > { %2149 = vst [vmem:[#allocation2 + $0x50] sm:$0xfe] %v2104_v31  ;;  %v2000_v17 = vmul.f32 %v4429_v45, %v1978_v15  ;;  %v2001_v60 = vmul.f32 %v4426_v10, %v1979_v39  ;;  %v4653_v3 = vld [vmem:[#allocation2 + $0xd8] sm:$0x1]  ;;  %v4666_v39 = vld [vmem:[#allocation2 + $0x60] sm:$0x1] }
 0x1cd   : > { %2151 = vst [vmem:[#allocation2 + $0xb8] sm:$0x1] %v2104_v31  ;;  %2197 = vrot.lane.b32.xlu2 %v4551_v52, %s3435_s7 }
 0x1ce   : > { %2193 = vrot.lane.b32.xlu1 %v4549_v21, %s3435_s7  ;;  %2150 = vst [vmem:[#allocation2 + $0xf0] sm:$0xfe] %v2105_v57  ;;  %v2022_v42 = vadd.f32 %v4437_v61, %v2000_v17  ;;  %v2023_v45 = vadd.f32 %v4435_v40, %v2001_v60  ;;  %2555 = vrot.lane.b32.xlu0 %v4553_v12, %s3435_s7  ;;  %v2463_v40 = vld [vmem:[#allocation2 + $0x38] sm:$0xff]  ;;  %v4649_v32 = vpop.permute.xlu0 %2629  ;;  %v4658_v46 = vld [vmem:[#allocation2 + $0xc0] sm:$0x1] }
 0x1cf   : > { %2152 = vst [vmem:[#allocation2 + $0x28] sm:$0x1] %v2105_v57  ;;  %v4572_v61 = vld [vmem:[#allocation2 + $0x98] sm:$0x1]  ;;  %v2479_v63 = vrot.slane %v2463_v40, 7  ;;  %v2258_v57 = vld [vmem:[#allocation2 + $0xa8] sm:$0xff] }
 0x1d0   : > { %v2038_v10 = vmax.f32 %v2022_v42, 0.0  ;;  %v2039_v30 = vmax.f32 %v2023_v45, 0.0  ;;  %4930 = vst [vmem:[#allocation6_spill] sm:$0xff] %v4658_v46  ;;  %v4664_v15 = vld [vmem:[#allocation2 + $0xc0] sm:$0x1]  ;;  %v2274_v17 = vrot.slane %v2258_v57, 7 }
 0x1d2   : > { %v2106_v14 = vrot.slane %v2038_v10, 7  ;;  %v2107_v34 = vrot.slane %v2039_v30, 7  ;;  %v4677_v10 = vld [vmem:[#allocation2 + $0x88] sm:$0xff] }
 0x1d3   : > { %v4679_v30 = vld [vmem:[#allocation2 + $0x88] sm:$0xfe]  ;;  %v4707_v57 = vld [vmem:[#allocation2 + $0x50] sm:$0xfe] }
 0x1d4   : > { %2153 = vst [vmem:[#allocation2 + $0x100] sm:$0xfe] %v2106_v14 }
 0x1d5   : > { %2155 = vst [vmem:[#allocation2 + $0x40] sm:$0x1] %v2106_v14  ;;  %2199 = vrot.lane.b32.xlu2 %v4565_v4, %s3435_s7  ;;  %v4918_v14 = vrot.slane %v4677_v10, 7 }
 0x1d6   : > { %2195 = vrot.lane.b32.xlu1 %v4563_v36, %s3435_s7  ;;  %2154 = vst [vmem:[#allocation2] sm:$0xfe] %v2107_v34  ;;  %2281 = vrot.lane.b32.xlu0 %v2271_v6, %s3435_s7 }
 0x1d7   : > { %2156 = vst [vmem:[#allocation2 + $0xe8] sm:$0x1] %v2107_v34 }
 0x1d8   : > { %4931 = vst [vmem:[#allocation7_spill] sm:$0xff] %v4679_v30 }
 0x1dd   : > { %2407 = vrot.lane.b32.xlu2 %v4574_v1, %s3435_s7 }
 0x1de   : > { %2551 = vrot.lane.b32.xlu1 %v4572_v61, %s3435_s7  ;;  %2489 = vrot.lane.b32.xlu0 %v2479_v63, %s3435_s7 }
 0x1e5   : > { %2553 = vrot.lane.b32.xlu2 %v4583_v59, %s3435_s7 }
 0x1e6   : > { %2405 = vrot.lane.b32.xlu1 %v4581_v8, %s3435_s7  ;;  %2635 = vrot.lane.b32.xlu0 %v2479_v63, %s3435_s7 }
 0x1ed   : > { %2559 = vrot.lane.b32.xlu2 %v4590_v47, %s3435_s7 }
 0x1ee   : > { %2203 = vrot.lane.b32.xlu1 %v4592_v49, %s3435_s7  ;;  %2201 = vrot.lane.b32.xlu0 %v4598_v2, %s3435_s7 }
 0x1f5   : > { %2205 = vrot.lane.b32.xlu2 %v4602_v18, %s3435_s7 }
 0x1f6   : > { %2411 = vrot.lane.b32.xlu1 %v4604_v16, %s3435_s7  ;;  %2409 = vrot.lane.b32.xlu0 %v4610_v37, %s3435_s7 }
 0x1fd   : > { %2413 = vrot.lane.b32.xlu2 %v4614_v11, %s3435_s7 }
 0x1fe   : > { %2557 = vrot.lane.b32.xlu1 %v4616_v27, %s3435_s7  ;;  %2207 = vrot.lane.b32.xlu0 %v4622_v24, %s3435_s7 }
 0x1ff   : > { %v4626_v38 = vpop.permute.xlu2 %2547 }
 0x205   : > { %2285 = vrot.lane.b32.xlu2 %v2273_v56, %s3435_s7 }
 0x206   : > { %2283 = vrot.lane.b32.xlu1 %v2272_v19, %s3435_s7  ;;  %2415 = vrot.lane.b32.xlu0 %v4632_v25, %s3435_s7 }
 0x207   : > { %v4636_v41 = vpop.permute.xlu2 %2401 }
 0x20d   : > { %2493 = vrot.lane.b32.xlu2 %v4917_v54, %s3435_s7  ;;  %v4761_v54 = vld [vmem:[#allocation2 + $0xf0] sm:$0xfe] }
 0x20e   : > { %2491 = vrot.lane.b32.xlu1 %v2480_v55, %s3435_s7  ;;  %2561 = vrot.lane.b32.xlu0 %v4645_v0, %s3435_s7  ;;  %4934 = vst [vmem:[#allocation10_spill] sm:$0xff] %v4761_v54 }
 0x20f   : > { %v4651_v13 = vpop.permute.xlu2 %2279 }
 0x215   : > { %2211 = vrot.lane.b32.xlu2 %v4653_v3, %s3435_s7 }
 0x216   : > { %2637 = vrot.lane.b32.xlu1 %v2480_v55, %s3435_s7  ;;  %2567 = vrot.lane.b32.xlu0 %v4658_v46, %s3435_s7  ;;  %v4698_v55 = vld [vmem:[#allocation2 + $0x28] sm:$0x1]  ;;  %v2259_v46 = vld [vmem:[#allocation2 + $0x50] sm:$0xff] }
 0x217   : > { %v4662_v44 = vpop.permute.xlu2 %2487 }
 0x218   : > { %v2400_v5 = vpop.permute.xlu1 %2399  ;;  %v2190_v31 = vpop.permute.xlu0 %2189 }
 0x219   : > { %v2237_v34 = vmax.f32 %v4470_v26, %v2190_v31 }
 0x21d   : > { %2419 = vrot.lane.b32.xlu2 %v4664_v15, %s3435_s7 }
 0x21e   : > { %2563 = vrot.lane.b32.xlu1 %v4666_v39, %s3435_s7  ;;  %2287 = vrot.lane.b32.xlu0 %v2274_v17, %s3435_s7 }
 0x21f   : > { %v4675_v42 = vpop.permute.xlu2 %2633 }
 0x220   : > { %v4673_v60 = vpop.permute.xlu1 %2545  ;;  %v2192_v45 = vpop.permute.xlu0 %2191 }
 0x221   : > { %v2238_v6 = vmax.f32 %v4492_v43, %v2192_v45  ;;  %v4700_v43 = vld [vmem:[#allocation2 + $0x88] sm:$0xfe]  ;;  %v3369_v45 = vunpack.i.h.bf16 %v4628_v48 }
 0x225   : > { %2565 = vrot.lane.b32.xlu2 %v4679_v30, %s3435_s7 }
 0x226   : > { %2209 = vrot.lane.b32.xlu1 %v4681_v33, %s3435_s7  ;;  %2495 = vrot.lane.b32.xlu0 %v4918_v14, %s3435_s7  ;;  %v4766_v14 = vld [vmem:[#allocation2 + $0xe8] sm:$0x1] }
 0x227   : > { %v4693_v63 = vpop.permute.xlu2 %2197 }
 0x228   : > { %v2278_v40 = vpop.permute.xlu1 %2277  ;;  %v2398_v56 = vpop.permute.xlu0 %2397 }
 0x229   : > { %v2301_v20 = vmax.f32 %v2237_v34, %v2278_v40  ;;  %v2302_v28 = vmax.f32 %v2238_v6, %v2278_v40 }
 0x22b   : > { %v2333_v19 = vmax.f32 %v2301_v20, %v4507_v53  ;;  %v2334_v7 = vmax.f32 %v2302_v28, %v4463_v51 }
 0x22d   : > { %v2365_v26 = vmax.f32 %v2333_v19, %v4365_v23  ;;  %v2366_v31 = vmax.f32 %v2334_v7, %v4369_v35  ;;  %2571 = vrot.lane.b32.xlu2 %v4698_v55, %s3435_s7  ;;  %v3368_v35 = vunpack.i.l.bf16 %v4628_v48  ;;  %v4720_v19 = vld [vmem:[#allocation2 + $0x100] sm:$0xfe]  ;;  %v4722_v7 = vld [vmem:[#allocation2 + $0xb8] sm:$0x1]  ;;  %v4728_v48 = vld [vmem:[#allocation2 + $0xf0] sm:$0xfe] }
 0x22e   : > { %2417 = vrot.lane.b32.xlu1 %v4700_v43, %s3435_s7  ;;  %2213 = vrot.lane.b32.xlu0 %v4707_v57, %s3435_s7  ;;  %4932 = vst [vmem:[#allocation8_spill] sm:$0xff] %v4728_v48 }
 0x22f   : > { %v2445_v53 = vmax.f32 %v2365_v26, %v2398_v56  ;;  %v2446_v23 = vmax.f32 %v2366_v31, %v2400_v5  ;;  %v2200_v17 = vpop.permute.xlu2 %2199 }
 0x230   : > { %v2486_v51 = vpop.permute.xlu1 %2485  ;;  %v4716_v40 = vpop.permute.xlu0 %2403 }
 0x231   : > { %v2509_v34 = vmax.f32 %v2445_v53, %v2486_v51  ;;  %v2510_v6 = vmax.f32 %v2446_v23, %v2486_v51  ;;  %v4742_v53 = vld [vmem:[#allocation2] sm:$0xfe]  ;;  %v4744_v23 = vld [vmem:[#allocation2 + $0x28] sm:$0x1]  ;;  %v4750_v51 = vld [vmem:[#allocation2 + $0x40] sm:$0x1] }
 0x232   : > { %4933 = vst [vmem:[#allocation9_spill] sm:$0xff] %v4744_v23 }
 0x233   : > { %v2589_v20 = vmax.f32 %v2509_v34, %v3368_v35  ;;  %v2590_v28 = vmax.f32 %v2510_v6, %v3369_v45 }
 0x235   : > { %v2653_v56 = vmax.f32 %v2589_v20, %v4649_v32  ;;  %v2654_v5 = vmax.f32 %v2590_v28, %v4649_v32  ;;  %2217 = vrot.lane.b32.xlu2 %v4720_v19, %s3435_s7  ;;  %v2260_v20 = vld [vmem:[#allocation2 + $0x100] sm:$0xff] }
 0x236   : > { %2215 = vrot.lane.b32.xlu1 %v4722_v7, %s3435_s7  ;;  %2421 = vrot.lane.b32.xlu0 %v4728_v48, %s3435_s7 }
 0x237   : > { %2670 = vst.msk [vmem:[%s4730_s27 - $0x1] sm:$0xfe] %vm2669_vm7, %v2653_v56  ;;  %v2408_v26 = vpop.permute.xlu2 %2407  ;;  %v2276_v56 = vrot.slane %v2260_v20, 7 }
 0x238   : > { %2672 = vst.msk [vmem:[%s4730_s27 + $0x7] sm:$0x1] %vm2671_vm8, %v2654_v5  ;;  %v4738_v32 = vpop.permute.xlu1 %2631  ;;  %v4740_v31 = vpop.permute.xlu0 %2549 }
 0x23d   : > { %2425 = vrot.lane.b32.xlu2 %v4742_v53, %s3435_s7 }
 0x23e   : > { %2423 = vrot.lane.b32.xlu1 %v4744_v23, %s3435_s7  ;;  %2219 = vrot.lane.b32.xlu0 %v4750_v51, %s3435_s7 }
 0x23f   : > { %v4754_v35 = vpop.permute.xlu2 %2553 }
 0x240   : > { %v2194_v45 = vpop.permute.xlu1 %2193  ;;  %v4756_v34 = vpop.permute.xlu0 %2555 }
 0x241   : > { %v2239_v6 = vmax.f32 %v4549_v21, %v2194_v45  ;;  %v2242_v21 = vmax.f32 %v4565_v4, %v2200_v17  ;;  %v2275_v4 = vrot.slane %v2259_v46, 7  ;;  %v2241_v17 = vmax.f32 %v4551_v52, %v4693_v63 }
 0x242   : > { %v4935_v46 = vrot.slane %v4677_v10, 7 }
 0x243   : > { %v2303_v28 = vmax.f32 %v2239_v6, %v4651_v13 }
 0x245   : > { %v2335_v5 = vmax.f32 %v2303_v28, %v4481_v29  ;;  %2291 = vrot.lane.b32.xlu2 %v2276_v56, %s3435_s7  ;;  %v2468_v56 = vld [vmem:[#allocation2] sm:$0xff] }
 0x246   : > { %2569 = vrot.lane.b32.xlu1 %v4761_v54, %s3435_s7  ;;  %2427 = vrot.lane.b32.xlu0 %v4766_v14, %s3435_s7  ;;  %v2484_v48 = vrot.slane %v2468_v56, 7 }
 0x247   : > { %v2367_v30 = vmax.f32 %v2335_v5, %v4485_v9  ;;  %v4772_v6 = vpop.permute.xlu2 %2559 }
 0x248   : > { %v2196_v45 = vpop.permute.xlu1 %2195  ;;  %v2282_v28 = vpop.permute.xlu0 %2281 }
 0x249   : > { %v2447_v29 = vmax.f32 %v2367_v30, %v4636_v41  ;;  %v2240_v20 = vmax.f32 %v4563_v36, %v2196_v45  ;;  %v2306_v54 = vmax.f32 %v2242_v21, %v2282_v28 }
 0x24b   : > { %v2511_v23 = vmax.f32 %v2447_v29, %v4662_v44  ;;  %v2304_v9 = vmax.f32 %v2240_v20, %v4651_v13  ;;  %v2338_v5 = vmax.f32 %v2306_v54, %v4574_v1  ;;  %v2305_v54 = vmax.f32 %v2241_v17, %v2282_v28 }
 0x24c   : > { %v4936_v20 = vrot.slane %v4638_v22, 7 }
 0x24d   : > { %v2591_v41 = vmax.f32 %v2511_v23, %v4673_v60  ;;  %v2336_v36 = vmax.f32 %v2304_v9, %v4523_v58  ;;  %2499 = vrot.lane.b32.xlu2 %v2484_v48, %s3435_s7  ;;  %v2370_v30 = vmax.f32 %v2338_v5, %v4572_v61  ;;  %v2467_v61 = vld [vmem:[#allocation2 + $0xf0] sm:$0xff] }
 0x24e   : > { %2289 = vrot.lane.b32.xlu1 %v2275_v4, %s3435_s7  ;;  %2641 = vrot.lane.b32.xlu0 %v4935_v46, %s3435_s7  ;;  %v2483_v29 = vrot.slane %v2467_v61, 7 }
 0x24f   : > { %v2655_v13 = vmax.f32 %v2591_v41, %v4738_v32  ;;  %v2368_v1 = vmax.f32 %v2336_v36, %v4461_v50  ;;  %v2450_v63 = vmax.f32 %v2370_v30, %v2408_v26  ;;  %v2206_v60 = vpop.permute.xlu2 %2205  ;;  %v2337_v50 = vmax.f32 %v2305_v54, %v4581_v8 }
 0x250   : > { %v2552_v52 = vpop.permute.xlu1 %2551  ;;  %v2490_v48 = vpop.permute.xlu0 %2489  ;;  %v2245_v46 = vmax.f32 %v4602_v18, %v2206_v60 }
 0x251   : > { %2673 = vst.msk [vmem:[%s4730_s27 + $0x7] sm:$0xfe] %vm2669_vm7, %v2655_v13  ;;  %v2448_v58 = vmax.f32 %v2368_v1, %v4716_v40  ;;  %v2514_v23 = vmax.f32 %v2450_v63, %v2490_v48  ;;  %v2369_v28 = vmax.f32 %v2337_v50, %v4539_v62 }
 0x253   : > { %v2512_v21 = vmax.f32 %v2448_v58, %v4662_v44  ;;  %v2594_v45 = vmax.f32 %v2514_v23, %v2552_v52 }
 0x255   : > { %v2592_v10 = vmax.f32 %v2512_v21, %v4626_v38  ;;  %v2658_v26 = vmax.f32 %v2594_v45, %v4675_v42  ;;  %2639 = vrot.lane.b32.xlu2 %v4936_v20, %s3435_s7 }
 0x256   : > { %2497 = vrot.lane.b32.xlu1 %v2483_v29, %s3435_s7 }
 0x257   : > { %v2656_v40 = vmax.f32 %v2592_v10, %v4738_v32  ;;  %2676 = vst.msk [vmem:[%s4730_s27 + $0x17] sm:$0x1] %vm2671_vm8, %v2658_v26  ;;  %v2414_v44 = vpop.permute.xlu2 %2413 }
 0x258   : > { %v2406_v8 = vpop.permute.xlu1 %2405  ;;  %v2636_v56 = vpop.permute.xlu0 %2635 }
 0x259   : > { %2674 = vst.msk [vmem:[%s4730_s27 + $0xf] sm:$0x1] %vm2671_vm8, %v2656_v40  ;;  %v2449_v38 = vmax.f32 %v2369_v28, %v2406_v8 }
 0x25b   : > { %v2513_v9 = vmax.f32 %v2449_v38, %v2490_v48 }
 0x25d   : > { %v2593_v5 = vmax.f32 %v2513_v9, %v4740_v31 }
 0x25e   : > { %2643 = vrot.lane.b32.xlu1 %v2483_v29, %s3435_s7 }
 0x25f   : > { %v2657_v22 = vmax.f32 %v2593_v5, %v4675_v42  ;;  %v2286_v4 = vpop.permute.xlu2 %2285 }
 0x260   : > { %v2204_v17 = vpop.permute.xlu1 %2203  ;;  %v2202_v62 = vpop.permute.xlu0 %2201  ;;  %v2309_v52 = vmax.f32 %v2245_v46, %v2286_v4 }
 0x261   : > { %2675 = vst.msk [vmem:[%s4730_s27 + $0xf] sm:$0xfe] %vm2669_vm7, %v2657_v22  ;;  %v2244_v63 = vmax.f32 %v4592_v49, %v2204_v17  ;;  %v2243_v42 = vmax.f32 %v4598_v2, %v2202_v62 }
 0x262   : > { %v2341_v23 = vmax.f32 %v2309_v52, %v4614_v11 }
 0x264   : > { %v2373_v60 = vmax.f32 %v2341_v23, %v4616_v27 }
 0x266   : > { %v2453_v40 = vmax.f32 %v2373_v60, %v2414_v44 }
 0x267   : > { %v2494_v32 = vpop.permute.xlu2 %2493 }
 0x268   : > { %v2412_v41 = vpop.permute.xlu1 %2411  ;;  %v2410_v36 = vpop.permute.xlu0 %2409 }
 0x26f   : > { %v2212_v30 = vpop.permute.xlu2 %2211 }
 0x270   : > { %v2558_v13 = vpop.permute.xlu1 %2557  ;;  %v2208_v1 = vpop.permute.xlu0 %2207 }
 0x271   : > { %v2246_v54 = vmax.f32 %v4622_v24, %v2208_v1 }
 0x273   : > { %v2310_v31 = vmax.f32 %v2246_v54, %v2286_v4 }
 0x275   : > { %v2342_v58 = vmax.f32 %v2310_v31, %v4632_v25 }
 0x277   : > { %v2420_v48 = vpop.permute.xlu2 %2419  ;;  %v2374_v18 = vmax.f32 %v2342_v58, %v4590_v47 }
 0x278   : > { %v2284_v61 = vpop.permute.xlu1 %2283  ;;  %v2416_v45 = vpop.permute.xlu0 %2415 }
 0x279   : > { %v2307_v21 = vmax.f32 %v2243_v42, %v2284_v61  ;;  %v2308_v50 = vmax.f32 %v2244_v63, %v2284_v61  ;;  %v2454_v25 = vmax.f32 %v2374_v18, %v2416_v45 }
 0x27b   : > { %v2339_v29 = vmax.f32 %v2307_v21, %v4610_v37  ;;  %v2340_v24 = vmax.f32 %v2308_v50, %v4604_v16  ;;  %v2518_v47 = vmax.f32 %v2454_v25, %v2494_v32 }
 0x27d   : > { %v2372_v49 = vmax.f32 %v2340_v24, %v4553_v12  ;;  %v2371_v2 = vmax.f32 %v2339_v29, %v4583_v59  ;;  %v2517_v59 = vmax.f32 %v2453_v40, %v2494_v32  ;;  %v2598_v5 = vmax.f32 %v2518_v47, %v4772_v6 }
 0x27e   : > { %v2248_v6 = vmax.f32 %v4653_v3, %v2212_v30 }
 0x27f   : > { %v2452_v10 = vmax.f32 %v2372_v49, %v2412_v41  ;;  %v2451_v26 = vmax.f32 %v2371_v2, %v2410_v36  ;;  %v4825_v11 = vpop.permute.xlu2 %2565  ;;  %v2597_v9 = vmax.f32 %v2517_v59, %v2558_v13 }
 0x280   : > { %v2492_v20 = vpop.permute.xlu1 %2491  ;;  %v2562_v16 = vpop.permute.xlu0 %2561 }
 0x281   : > { %v2515_v37 = vmax.f32 %v2451_v26, %v2492_v20  ;;  %v2516_v28 = vmax.f32 %v2452_v10, %v2492_v20 }
 0x283   : > { %v2595_v27 = vmax.f32 %v2515_v37, %v4754_v35  ;;  %v2596_v12 = vmax.f32 %v2516_v28, %v4756_v34 }
 0x285   : > { %v2659_v8 = vmax.f32 %v2595_v27, %v2636_v56  ;;  %v2660_v38 = vmax.f32 %v2596_v12, %v2636_v56  ;;  %v4937_v27 = vld [vmem:[#allocation8_spill] sm:$0xff] }
 0x287   : > { %2677 = vst.msk [vmem:[%s4730_s27 + $0x17] sm:$0xfe] %vm2669_vm7, %v2659_v8  ;;  %v4834_v44 = vpop.permute.xlu2 %2571  ;;  %v4939_v8 = vld [vmem:[#allocation10_spill] sm:$0xff] }
 0x288   : > { %2678 = vst.msk [vmem:[%s4730_s27 + $0x1f] sm:$0x1] %vm2671_vm8, %v2660_v38  ;;  %v2638_v22 = vpop.permute.xlu1 %2637  ;;  %v4836_v62 = vpop.permute.xlu0 %2567 }
 0x289   : > { %v2661_v4 = vmax.f32 %v2597_v9, %v2638_v22  ;;  %v2662_v17 = vmax.f32 %v2598_v5, %v2638_v22 }
 0x28b   : > { %2679 = vst.msk [vmem:[%s4730_s27 + $0x1f] sm:$0xfe] %vm2669_vm7, %v2661_v4 }
 0x28c   : > { %2680 = vst.msk [vmem:[%s4730_s27 + $0x27] sm:$0x1] %vm2671_vm8, %v2662_v17 }
 0x28f   : > { %v2218_v35 = vpop.permute.xlu2 %2217 }
 0x290   : > { %v2564_v34 = vpop.permute.xlu1 %2563  ;;  %v2288_v56 = vpop.permute.xlu0 %2287  ;;  %v2251_v49 = vmax.f32 %v4720_v19, %v2218_v35  ;;  %v4938_v19 = vld [vmem:[#allocation9_spill] sm:$0xff] }
 0x291   : > { %v2312_v1 = vmax.f32 %v2248_v6, %v2288_v56 }
 0x293   : > { %v2344_v46 = vmax.f32 %v2312_v1, %v4664_v15 }
 0x295   : > { %v2376_v58 = vmax.f32 %v2344_v46, %v4666_v39 }
 0x297   : > { %v4842_v32 = vpop.permute.xlu2 %2425  ;;  %v2456_v23 = vmax.f32 %v2376_v58, %v2420_v48 }
 0x298   : > { %v2210_v41 = vpop.permute.xlu1 %2209  ;;  %v2496_v13 = vpop.permute.xlu0 %2495 }
 0x299   : > { %v2247_v36 = vmax.f32 %v4681_v33, %v2210_v41  ;;  %v2520_v50 = vmax.f32 %v2456_v23, %v2496_v13 }
 0x29b   : > { %v2311_v54 = vmax.f32 %v2247_v36, %v2288_v56  ;;  %v2600_v15 = vmax.f32 %v2520_v50, %v2564_v34 }
 0x29d   : > { %v2343_v31 = vmax.f32 %v2311_v54, %v4700_v43 }
 0x29f   : > { %v2292_v52 = vpop.permute.xlu2 %2291  ;;  %v2375_v61 = vmax.f32 %v2343_v31, %v4645_v0 }
 0x2a0   : > { %v2418_v63 = vpop.permute.xlu1 %2417  ;;  %v2214_v42 = vpop.permute.xlu0 %2213  ;;  %v2315_v25 = vmax.f32 %v2251_v49, %v2292_v52 }
 0x2a1   : > { %v2455_v3 = vmax.f32 %v2375_v61, %v2418_v63  ;;  %v2249_v10 = vmax.f32 %v4707_v57, %v2214_v42  ;;  %v4940_v57 = vld [vmem:[#allocation6_spill] sm:$0xff] }
 0x2a2   : > { %v2347_v37 = vmax.f32 %v2315_v25, %v4742_v53 }
 0x2a3   : > { %v2519_v45 = vmax.f32 %v2455_v3, %v2496_v13 }
 0x2a4   : > { %v2379_v38 = vmax.f32 %v2347_v37, %v4939_v8 }
 0x2a5   : > { %v2599_v29 = vmax.f32 %v2519_v45, %v2562_v16 }
 0x2a6   : > { %v2459_v17 = vmax.f32 %v2379_v38, %v4842_v32 }
 0x2a7   : > { %v2500_v30 = vpop.permute.xlu2 %2499 }
 0x2a8   : > { %v2216_v33 = vpop.permute.xlu1 %2215  ;;  %v2422_v21 = vpop.permute.xlu0 %2421  ;;  %v2523_v36 = vmax.f32 %v2459_v17, %v2500_v30 }
 0x2a9   : > { %v2250_v26 = vmax.f32 %v4722_v7, %v2216_v33  ;;  %v4941_v7 = vld [vmem:[#allocation7_spill] sm:$0xff] }
 0x2af   : > { %v2640_v24 = vpop.permute.xlu2 %2639 }
 0x2b0   : > { %v2424_v43 = vpop.permute.xlu1 %2423  ;;  %v2663_v18 = vmax.f32 %v2599_v29, %v2640_v24  ;;  %v2664_v60 = vmax.f32 %v2600_v15, %v2640_v24  ;;  %v2220_v39 = vpop.permute.xlu0 %2219 }
 0x2b1   : > { %v2252_v0 = vmax.f32 %v4750_v51, %v2220_v39 }
 0x2b2   : > { %2681 = vst.msk [vmem:[%s4730_s27 + $0x27] sm:$0xfe] %vm2669_vm7, %v2663_v18 }
 0x2b3   : > { %2682 = vst.msk [vmem:[%s4730_s27 + $0x2f] sm:$0x1] %vm2671_vm8, %v2664_v60  ;;  %v2316_v2 = vmax.f32 %v2252_v0, %v2292_v52 }
 0x2b5   : > { %v2348_v20 = vmax.f32 %v2316_v2, %v4766_v14 }
 0x2b7   : > { %v2380_v51 = vmax.f32 %v2348_v20, %v4698_v55 }
 0x2b8   : > { %v2570_v48 = vpop.permute.xlu1 %2569  ;;  %v2428_v47 = vpop.permute.xlu0 %2427 }
 0x2b9   : > { %v2460_v14 = vmax.f32 %v2380_v51, %v2428_v47  ;;  %v2603_v1 = vmax.f32 %v2523_v36, %v2570_v48 }
 0x2bb   : > { %v2524_v34 = vmax.f32 %v2460_v14, %v2500_v30 }
 0x2c0   : > { %v2290_v40 = vpop.permute.xlu1 %2289  ;;  %v2642_v6 = vpop.permute.xlu0 %2641 }
 0x2c1   : > { %v2313_v28 = vmax.f32 %v2249_v10, %v2290_v40  ;;  %v2314_v16 = vmax.f32 %v2250_v26, %v2290_v40 }
 0x2c3   : > { %v2345_v12 = vmax.f32 %v2313_v28, %v4937_v27  ;;  %v2346_v59 = vmax.f32 %v2314_v16, %v4938_v19 }
 0x2c5   : > { %v2378_v9 = vmax.f32 %v2346_v59, %v4940_v57  ;;  %v2377_v5 = vmax.f32 %v2345_v12, %v4941_v7 }
 0x2c7   : > { %v2458_v22 = vmax.f32 %v2378_v9, %v2424_v43  ;;  %v2457_v53 = vmax.f32 %v2377_v5, %v2422_v21 }
 0x2c8   : > { %v2498_v4 = vpop.permute.xlu1 %2497 }
 0x2c9   : > { %v2521_v35 = vmax.f32 %v2457_v53, %v2498_v4  ;;  %v2522_v55 = vmax.f32 %v2458_v22, %v2498_v4 }
 0x2cb   : > { %v2601_v56 = vmax.f32 %v2521_v35, %v4825_v11  ;;  %v2602_v41 = vmax.f32 %v2522_v55, %v4836_v62  ;;  %v2604_v11 = vmax.f32 %v2524_v34, %v4834_v44 }
 0x2cd   : > { %v2665_v13 = vmax.f32 %v2601_v56, %v2642_v6  ;;  %v2666_v32 = vmax.f32 %v2602_v41, %v2642_v6 }
 0x2cf   : > { %2683 = vst.msk [vmem:[%s4730_s27 + $0x2f] sm:$0xfe] %vm2669_vm7, %v2665_v13 }
 0x2d0   : > { %2684 = vst.msk [vmem:[%s4730_s27 + $0x37] sm:$0x1] %vm2671_vm8, %v2666_v32  ;;  %v2644_v62 = vpop.permute.xlu1 %2643 }
 0x2d1   : > { %v2667_v54 = vmax.f32 %v2603_v1, %v2644_v62  ;;  %v2668_v46 = vmax.f32 %v2604_v11, %v2644_v62 }
 0x2d3   : > { %2685 = vst.msk [vmem:[%s4730_s27 + $0x37] sm:$0xfe] %vm2669_vm7, %v2667_v54 }
 0x2d4   : > { %2686 = vst.msk [vmem:[%s4730_s27 + $0x3f] sm:$0x1] %vm2671_vm8, %v2668_v46 }
 0x2d5   : > { %3397 = shalt.err (!%p3394_p3)
}
 0x2d6   : > { %s3436_s20 = smov 128   ;;  %s3437_s22 = smov 8  }
 0x2d7   : > { %3322 = dma.vmem_to_hbm [thread:$0]  (%p3501_p5), %s2701_s6, 1024, %s2703_s19, %s2688_s8, %s3436_s20, %s3436_s20, %s3437_s22  }
 0x2d8 PF: > { %p3328_p4 = scmp.ge.s32.totalorder %s3432_s18, 2  ;;  %s2717_s23 = sand.u32 1, %s3420_s15  }
 0x2d9   : > { %s2718_s27 = scalar_lea.sflag [#allocation4], %s2717_s23 }
 0x2da   : > { %p3325_p7 = pnand %p3328_p4, %p3505_p6 }
 0x2dc   : > { %p3326_p8 = pneg %p3325_p7 }
 0x2de   : > { %3415 = dma.done.wait (%p3326_p8), %s2718_s27, 1024  }
 0x2df   : > { %3417 = vsyncadd (%p3326_p8), %s2718_s27, 4294966272  ;;  %p14_p9 = scmp.ge.s32.totalorder %s3488_s21, 4   ;;  %s4942_s15 = smov %s3424_s16 }
 0x2e0   : > { %s4943_s16 = smov %s3428_s17  ;;  %s4944_s17 = smov %s3499_s24 }
 0x2e1   : > { %s4945_s18 = smov %s3488_s21  ;;  %16 = sbr.rel (!%p14_p9) target bundleno = 3 (0x3), region = 82 }
 0x2e6   :  { %2724 = vsyncpa [#allocation4], 1 }
 0x2e7   :  { %2726 = vsyncpa [#allocation4 + $0x1], 1 }

</bundles_post_ra>
